<compile_context>
chip_gen: v7x
topology: tpu7x:2x2x1
jax: 0.10.0
libtpu: 0.0.40
codegen_flags: <defaults>
</compile_context>

<pallas_src>
import functools

import jax
import jax.numpy as jnp
from jax.experimental import pallas as pl
from jax.experimental.pallas import tpu as pltpu

_BN_EPS = 1e-5


def _round_up(x, m):
    return (x + m - 1) // m * m


# ------------------------------ Pallas kernel ------------------------------- #

def _r2block_kernel(x_ref, mask_ref, m_in_ref, m1_ref, m2_ref, st_ref, o_ref, *, t):
    """conv_in + two recurrent blocks for a whole batch group, all intermediates in VMEM.

    Activation layout: (M, W*C) slab with M = images_per_step * block_rows; each image
    occupies block_rows rows laid out as [1 zero border row, H image rows, zero rows].
    A 3x3/stride-1/pad-1 conv on this layout is three (M,K)x(K,W*Cout) matmuls (one per
    kernel row ky); the kx sweep and the W-edge zero padding live inside the block-banded
    weight matrices, the H-edge padding in the zero border rows, which the `mask`
    multiply keeps exactly zero after every conv (so the invariant survives the chain).
    """
    cd = m1_ref.dtype                       # MXU operand dtype (bf16 perf mode / f32 check mode)
    mask = mask_ref[...]                    # (M, W*Cout) f32: 1 on image rows, 0 on border rows
    wcout = mask.shape[-1]
    zrow = jnp.zeros((1, wcout), jnp.float32)

    def shift_down(a):                      # out[p] = a[p-1], row 0 <- 0 (zero-fill, no wrap)
        return jnp.concatenate([zrow, a[:-1, :]], axis=0)

    def shift_up(a):                        # out[p] = a[p+1], last row <- 0
        return jnp.concatenate([a[1:, :], zrow], axis=0)

    def conv(xpad, w3, s, sh, relu):
        # xpad: (M, K) f32 padded-layout slab (border rows zero). One cast per conv input.
        xv = xpad.astype(cd)
        a0 = jnp.dot(xv, w3[0], preferred_element_type=jnp.float32)
        a1 = jnp.dot(xv, w3[1], preferred_element_type=jnp.float32)
        a2 = jnp.dot(xv, w3[2], preferred_element_type=jnp.float32)
        # conv output at padded row p uses padded rows p-1 / p / p+1  (ky = 0 / 1 / 2).
        acc = shift_down(a0) + a1 + shift_up(a2)
        acc = acc * s + sh                  # folded conv-bias + eval-mode BatchNorm (f32)
        if relu:
            acc = jnp.maximum(acc, 0.0)
        return acc * mask                   # re-zero border rows -> stays valid padded layout

    # Load each (K, W*Cout) weight slice once; reused across the t recurrent iterations.
    w_in = (m_in_ref[0], m_in_ref[1], m_in_ref[2])
    w1 = (m1_ref[0], m1_ref[1], m1_ref[2])
    w2 = (m2_ref[0], m2_ref[1], m2_ref[2])

    s_in, t_in = st_ref[0:1, :], st_ref[1:2, :]
    s1, t1 = st_ref[2:3, :], st_ref[3:4, :]
    s2, t2 = st_ref[4:5, :], st_ref[5:6, :]

    def recurrent(x_in, w3, s, sh):
        # Mirrors the PyTorch loop: for i in range(t): x1 = conv(x) if i == 0 else conv(x + x1)
        x1 = None
        for i in range(t):
            inp = x_in if i == 0 else x_in + x1     # residual add stays in f32
            x1 = conv(inp, w3, s, sh, relu=True)
        return x1

    x0 = conv(x_ref[...], w_in, s_in, t_in, relu=False)   # conv_in: bias only, no BN/ReLU
    x1 = recurrent(x0, w1, s1, t1)
    x2 = recurrent(x1, w2, s2, t2)
    o_ref[...] = x2.astype(o_ref.dtype)


# --------------------------- one-time weight prep ---------------------------- #

def _banded_weight(w_hwio, W):
    """(3, 3, Cin, Cout) -> (3, W*Cin, W*Cout) block-banded matrices.

    M[ky, wi*Cin + ci, wo*Cout + co] = w[ky, wi - wo + 1, ci, co] if 0 <= wi-wo+1 < 3 else 0.
    Each ky slice realizes the kx sweep (incl. W-edge zero padding) of a 3x3/stride-1/pad-1
    conv applied to a row stored as W*Cin lanes.
    """
    _, _, Cin, Cout = w_hwio.shape
    wi = jnp.arange(W)[:, None]
    wo = jnp.arange(W)[None, :]
    kx = wi - wo + 1                                        # (W, W)
    valid = (kx >= 0) & (kx <= 2)
    g = w_hwio[:, jnp.clip(kx, 0, 2), :, :]                 # (3, W, W, Cin, Cout)
    g = jnp.where(valid[None, :, :, None, None], g, 0.0)
    g = jnp.transpose(g, (0, 1, 3, 2, 4))                   # (3, wi, Cin, wo, Cout)
    return g.reshape(3, W * Cin, W * Cout)


def prepare_r2block(params, W, use_bf16=True):
    """Hoisted, call-once prep: banded weight matrices + fused conv-bias/BN scale-shift."""
    Cin, Cout = params["w_in"].shape[2], params["w_in"].shape[3]
    wcin, wcout = W * Cin, W * Cout
    assert wcout % 128 == 0, "W*Cout must be a multiple of 128 for the lane-dense slab"
    k_in = _round_up(wcin, 128)                             # lane-pad conv_in contraction dim
    cd = jnp.bfloat16 if use_bf16 else jnp.float32

    m_in = jnp.pad(_banded_weight(params["w_in"], W),
                   ((0, 0), (0, k_in - wcin), (0, 0))).astype(cd)
    m1 = _banded_weight(params["w1"], W).astype(cd)
    m2 = _banded_weight(params["w2"], W).astype(cd)

    def rowvec(v):                                          # (Cout,) -> (W*Cout,) [wo*Cout+co]
        return jnp.tile(v.astype(jnp.float32), W)

    def bn_fold(b, g, be, rm, rv):                          # conv bias folded into the shift
        sc = g / jnp.sqrt(rv + _BN_EPS)
        return rowvec(sc), rowvec(be - rm * sc + b * sc)

    s_in = rowvec(jnp.ones((Cout,), jnp.float32))           # conv_in: scale=1, shift=bias
    t_in = rowvec(params["b_in"])
    s1, t1 = bn_fold(params["b1"], params["g1"], params["be1"], params["rm1"], params["rv1"])
    s2, t2 = bn_fold(params["b2"], params["g2"], params["be2"], params["rm2"], params["rv2"])
    st = jnp.stack([s_in, t_in, s1, t1, s2, t2])            # (6, W*Cout) f32 epilogue table
    return m_in, m1, m2, st


# ------------------------------ R2Block forward ------------------------------ #

@functools.partial(jax.jit, static_argnames=("t", "grid_steps"))
def r2block_forward(weights, x_nchw, *, t=2, grid_steps=1):
    """Fused R2Block forward.  `weights` comes from prepare_r2block (called once).

    grid_steps: 1 on single-TensorCore chips (v5e/v6e, batch fully folded into matmul M);
                2 on v7x so both TensorCores each take half the batch ("parallel" axis).
    """
    m_in, m1, m2, st = weights
    N, Cin, H, W = x_nchw.shape
    wcout = st.shape[-1]
    Cout = wcout // W
    k_in = m_in.shape[1]
    assert N % grid_steps == 0, "batch size must be divisible by grid_steps"
    G = N // grid_steps                                     # images folded into M per step
    block_rows = _round_up(H + 2, 8)                        # 8-sublane-aligned per-image block
    M = G * block_rows

    # Layout glue (cheap XLA ops fused under jit): NCHW -> zero-bordered lane-dense slab.
    xs = jnp.transpose(x_nchw, (0, 2, 3, 1)).reshape(N, H, W * Cin).astype(jnp.float32)
    xs = jnp.pad(xs, ((0, 0), (0, 0), (0, k_in - W * Cin)))
    slab = jnp.zeros((N, block_rows, k_in), jnp.float32)
    slab = slab.at[:, 1:H + 1, :].set(xs).reshape(N * block_rows, k_in)

    # Interior-row mask: identical for every grid step -> DMA'd once, stays resident.
    r = jnp.arange(block_rows)
    interior = ((r >= 1) & (r <= H)).astype(jnp.float32)
    mask = jnp.tile(interior, G)[:, None] * jnp.ones((1, wcout), jnp.float32)

    n_rconv = 2 * t                                         # Cout->Cout convs in the chain
    flops = grid_steps * (3 * 2 * M * k_in * wcout + n_rconv * 3 * 2 * M * wcout * wcout)
    bytes_accessed = (slab.size * 4 + mask.size * 4 + N * block_rows * wcout * 4
                      + (m_in.size + m1.size + m2.size) * m_in.dtype.itemsize + st.size * 4)

    out_slab = pl.pallas_call(
        functools.partial(_r2block_kernel, t=t),
        out_shape=jax.ShapeDtypeStruct((N * block_rows, wcout), jnp.float32),
        grid=(grid_steps,),
        in_specs=[
            pl.BlockSpec((M, k_in), lambda i: (i, 0)),              # activation slab
            pl.BlockSpec((M, wcout), lambda i: (0, 0)),             # border mask (resident)
            pl.BlockSpec((3, k_in, wcout), lambda i: (0, 0, 0)),    # conv_in banded weights
            pl.BlockSpec((3, wcout, wcout), lambda i: (0, 0, 0)),   # block-1 banded weights
            pl.BlockSpec((3, wcout, wcout), lambda i: (0, 0, 0)),   # block-2 banded weights
            pl.BlockSpec((6, wcout), lambda i: (0, 0)),             # fused scale/shift rows
        ],
        out_specs=pl.BlockSpec((M, wcout), lambda i: (i, 0)),
        compiler_params=pltpu.CompilerParams(dimension_semantics=("parallel",)),
        cost_estimate=pl.CostEstimate(flops=flops, transcendentals=0,
                                      bytes_accessed=bytes_accessed),
    )(slab, mask, m_in, m1, m2, st)

    out = out_slab.reshape(N, block_rows, W, Cout)[:, 1:H + 1]      # drop zero border rows
    return jnp.transpose(out, (0, 3, 1, 2))                         # NHWC -> NCHW


# ------------------------- plain-JAX reference (check) ----------------------- #

def _ref_forward(params, x_nchw, t=2):
    hi = jax.lax.Precision.HIGHEST

    def conv(x, w, b):
        y = jax.lax.conv_general_dilated(
            x, w, window_strides=(1, 1), padding="SAME",
            dimension_numbers=("NHWC", "HWIO", "NHWC"), precision=hi)
        return y + b

    def bn(x, g, be, rm, rv):
        return (x - rm) / jnp.sqrt(rv + _BN_EPS) * g + be

    def rec(xin, w, b, g, be, rm, rv):
        x1 = None
        for i in range(t):
            inp = xin if i == 0 else xin + x1
            x1 = jax.nn.relu(bn(conv(inp, w, b), g, be, rm, rv))
        return x1

    x = jnp.transpose(x_nchw, (0, 2, 3, 1))
    x0 = conv(x, params["w_in"], params["b_in"])
    x1 = rec(x0, params["w1"], params["b1"], params["g1"], params["be1"],
             params["rm1"], params["rv1"])
    x2 = rec(x1, params["w2"], params["b2"], params["g2"], params["be2"],
             params["rm2"], params["rv2"])
    return jnp.transpose(x2, (0, 3, 1, 2))


# ------------------------------ parameter init ------------------------------- #

def init_r2block_params(key, in_channels, out_channels):
    ks = jax.random.split(key, 14)

    def conv_w(k, ci, co):
        bound = 1.0 / (ci * 9) ** 0.5
        return jax.random.uniform(k, (3, 3, ci, co), jnp.float32, -bound, bound)

    def conv_b(k, ci, co):
        bound = 1.0 / (ci * 9) ** 0.5
        return jax.random.uniform(k, (co,), jnp.float32, -bound, bound)

    co = out_channels
    return dict(
        w_in=conv_w(ks[0], in_channels, co), b_in=conv_b(ks[1], in_channels, co),
        w1=conv_w(ks[2], co, co), b1=conv_b(ks[3], co, co),
        g1=1.0 + 0.1 * jax.random.normal(ks[4], (co,), jnp.float32),
        be1=0.1 * jax.random.normal(ks[5], (co,), jnp.float32),
        rm1=0.1 * jax.random.normal(ks[6], (co,), jnp.float32),
        rv1=1.0 + 0.1 * jnp.abs(jax.random.normal(ks[7], (co,), jnp.float32)),
        w2=conv_w(ks[8], co, co), b2=conv_b(ks[9], co, co),
        g2=1.0 + 0.1 * jax.random.normal(ks[10], (co,), jnp.float32),
        be2=0.1 * jax.random.normal(ks[11], (co,), jnp.float32),
        rm2=0.1 * jax.random.normal(ks[12], (co,), jnp.float32),
        rv2=1.0 + 0.1 * jnp.abs(jax.random.normal(ks[13], (co,), jnp.float32)),
    )


# ----------------------------------- main ------------------------------------ #

if __name__ == "__main__":
    key = jax.random.PRNGKey(0)
    k_x, k_p = jax.random.split(key)

    N, Cin, H, W = 2, 4, 16, 16
    Cout = 8

    x = jax.random.normal(k_x, (N, Cin, H, W), jnp.float32)   # NCHW, like PyTorch
    params = init_r2block_params(k_p, Cin, Cout)

    ref = jax.block_until_ready(_ref_forward(params, x, t=2))

    # 1) f32-operand mode vs plain-JAX (HIGHEST-precision) reference.  Tolerance covers a
    #    possible reduced-precision MXU lowering of f32 operands; a structural bug (wrong
    #    banded weights / row shift / BN fold) would be O(1) and is still caught.
    w_f32 = prepare_r2block(params, W, use_bf16=False)
    out_f32 = jax.block_until_ready(r2block_forward(w_f32, x, t=2, grid_steps=1))
    err_f32 = float(jnp.max(jnp.abs(out_f32 - ref)))
    assert err_f32 < 1e-1, f"f32 kernel mismatch: max err {err_f32}"

    # 2) perf configuration: bf16 MXU operands, f32 accumulate + f32 epilogue.
    #    Direct numeric check (looser: bf16 rounding compounds across 5 chained convs).
    w_bf16 = prepare_r2block(params, W, use_bf16=True)
    out = jax.block_until_ready(r2block_forward(w_bf16, x, t=2, grid_steps=1))
    err_bf16 = float(jnp.max(jnp.abs(out - ref)))
    assert err_bf16 < 2.5e-1, f"bf16 kernel mismatch: max err {err_bf16}"

    assert out.shape == (N, Cout, H, W), out.shape
    assert out.dtype == jnp.float32
    assert bool(jnp.all(jnp.isfinite(out)))
    assert bool(jnp.all(out >= 0.0))          # final op is a ReLU

    print("KERNEL_OK")
</pallas_src>

<mosaic_0001>
module attributes {stable_mosaic.version = 11 : i64} {
  func.func @_r2block_kernel(%arg0: i32, %arg1: memref<48x128xf32, #tpu.memory_space<vmem>>, %arg2: memref<48x128xf32, #tpu.memory_space<vmem>>, %arg3: memref<3x128x128xf32, #tpu.memory_space<vmem>>, %arg4: memref<3x128x128xf32, #tpu.memory_space<vmem>>, %arg5: memref<3x128x128xf32, #tpu.memory_space<vmem>>, %arg6: memref<6x128xf32, #tpu.memory_space<vmem>>, %arg7: memref<48x128xf32, #tpu.memory_space<vmem>>) attributes {dimension_semantics = [#tpu.dimension_semantics<parallel>], iteration_bounds = array<i64: 1>, scalar_prefetch = 0 : i64, scratch_operands = 0 : i64, tpu.core_type = #tpu.core_type<tc>, window_params = [{transform_indices = @transform_0, window_bounds = array<i64: 48, 128>}, {pipeline_mode = #tpu.pipeline_mode<synchronous>, transform_indices = @transform_1, window_bounds = array<i64: 48, 128>}, {pipeline_mode = #tpu.pipeline_mode<synchronous>, transform_indices = @transform_2, window_bounds = array<i64: 3, 128, 128>}, {pipeline_mode = #tpu.pipeline_mode<synchronous>, transform_indices = @transform_3, window_bounds = array<i64: 3, 128, 128>}, {pipeline_mode = #tpu.pipeline_mode<synchronous>, transform_indices = @transform_4, window_bounds = array<i64: 3, 128, 128>}, {pipeline_mode = #tpu.pipeline_mode<synchronous>, transform_indices = @transform_5, window_bounds = array<i64: 6, 128>}, {transform_indices = @transform_6, window_bounds = array<i64: 48, 128>}]} {
    %c0 = arith.constant 0 : index
    %c0_0 = arith.constant 0 : index
    %0 = vector.load %arg2[%c0, %c0_0] : memref<48x128xf32, #tpu.memory_space<vmem>>, vector<48x128xf32>
    %cst = arith.constant 0.000000e+00 : f32
    %1 = vector.broadcast %cst : f32 to vector<1x128xf32>
    %c0_1 = arith.constant 0 : index
    %c0_2 = arith.constant 0 : index
    %c0_3 = arith.constant 0 : index
    %2 = vector.load %arg3[%c0_1, %c0_2, %c0_3] : memref<3x128x128xf32, #tpu.memory_space<vmem>>, vector<1x128x128xf32>
    %3 = vector.shape_cast %2 : vector<1x128x128xf32> to vector<128x128xf32>
    %c1 = arith.constant 1 : index
    %c0_4 = arith.constant 0 : index
    %c0_5 = arith.constant 0 : index
    %4 = vector.load %arg3[%c1, %c0_4, %c0_5] : memref<3x128x128xf32, #tpu.memory_space<vmem>>, vector<1x128x128xf32>
    %5 = vector.shape_cast %4 : vector<1x128x128xf32> to vector<128x128xf32>
    %c2 = arith.constant 2 : index
    %c0_6 = arith.constant 0 : index
    %c0_7 = arith.constant 0 : index
    %6 = vector.load %arg3[%c2, %c0_6, %c0_7] : memref<3x128x128xf32, #tpu.memory_space<vmem>>, vector<1x128x128xf32>
    %7 = vector.shape_cast %6 : vector<1x128x128xf32> to vector<128x128xf32>
    %c0_8 = arith.constant 0 : index
    %c0_9 = arith.constant 0 : index
    %c0_10 = arith.constant 0 : index
    %8 = vector.load %arg4[%c0_8, %c0_9, %c0_10] : memref<3x128x128xf32, #tpu.memory_space<vmem>>, vector<1x128x128xf32>
    %9 = vector.shape_cast %8 : vector<1x128x128xf32> to vector<128x128xf32>
    %c1_11 = arith.constant 1 : index
    %c0_12 = arith.constant 0 : index
    %c0_13 = arith.constant 0 : index
    %10 = vector.load %arg4[%c1_11, %c0_12, %c0_13] : memref<3x128x128xf32, #tpu.memory_space<vmem>>, vector<1x128x128xf32>
    %11 = vector.shape_cast %10 : vector<1x128x128xf32> to vector<128x128xf32>
    %c2_14 = arith.constant 2 : index
    %c0_15 = arith.constant 0 : index
    %c0_16 = arith.constant 0 : index
    %12 = vector.load %arg4[%c2_14, %c0_15, %c0_16] : memref<3x128x128xf32, #tpu.memory_space<vmem>>, vector<1x128x128xf32>
    %13 = vector.shape_cast %12 : vector<1x128x128xf32> to vector<128x128xf32>
    %c0_17 = arith.constant 0 : index
    %c0_18 = arith.constant 0 : index
    %c0_19 = arith.constant 0 : index
    %14 = vector.load %arg5[%c0_17, %c0_18, %c0_19] : memref<3x128x128xf32, #tpu.memory_space<vmem>>, vector<1x128x128xf32>
    %15 = vector.shape_cast %14 : vector<1x128x128xf32> to vector<128x128xf32>
    %c1_20 = arith.constant 1 : index
    %c0_21 = arith.constant 0 : index
    %c0_22 = arith.constant 0 : index
    %16 = vector.load %arg5[%c1_20, %c0_21, %c0_22] : memref<3x128x128xf32, #tpu.memory_space<vmem>>, vector<1x128x128xf32>
    %17 = vector.shape_cast %16 : vector<1x128x128xf32> to vector<128x128xf32>
    %c2_23 = arith.constant 2 : index
    %c0_24 = arith.constant 0 : index
    %c0_25 = arith.constant 0 : index
    %18 = vector.load %arg5[%c2_23, %c0_24, %c0_25] : memref<3x128x128xf32, #tpu.memory_space<vmem>>, vector<1x128x128xf32>
    %19 = vector.shape_cast %18 : vector<1x128x128xf32> to vector<128x128xf32>
    %c0_26 = arith.constant 0 : index
    %c0_27 = arith.constant 0 : index
    %20 = vector.load %arg6[%c0_26, %c0_27] : memref<6x128xf32, #tpu.memory_space<vmem>>, vector<1x128xf32>
    %c1_28 = arith.constant 1 : index
    %c0_29 = arith.constant 0 : index
    %21 = vector.load %arg6[%c1_28, %c0_29] : memref<6x128xf32, #tpu.memory_space<vmem>>, vector<1x128xf32>
    %c2_30 = arith.constant 2 : index
    %c0_31 = arith.constant 0 : index
    %22 = vector.load %arg6[%c2_30, %c0_31] : memref<6x128xf32, #tpu.memory_space<vmem>>, vector<1x128xf32>
    %c3 = arith.constant 3 : index
    %c0_32 = arith.constant 0 : index
    %23 = vector.load %arg6[%c3, %c0_32] : memref<6x128xf32, #tpu.memory_space<vmem>>, vector<1x128xf32>
    %c4 = arith.constant 4 : index
    %c0_33 = arith.constant 0 : index
    %24 = vector.load %arg6[%c4, %c0_33] : memref<6x128xf32, #tpu.memory_space<vmem>>, vector<1x128xf32>
    %c5 = arith.constant 5 : index
    %c0_34 = arith.constant 0 : index
    %25 = vector.load %arg6[%c5, %c0_34] : memref<6x128xf32, #tpu.memory_space<vmem>>, vector<1x128xf32>
    %c0_35 = arith.constant 0 : index
    %c0_36 = arith.constant 0 : index
    %26 = vector.load %arg1[%c0_35, %c0_36] : memref<48x128xf32, #tpu.memory_space<vmem>>, vector<48x128xf32>
    %cst_37 = arith.constant dense<0.000000e+00> : vector<48x128xf32>
    %27 = tpu.matmul %26, %3, %cst_37 {dimension_numbers = #tpu.dot_dimension_numbers<[1], [0], [0], [1], [0, 0, 1, 1], [], []>} : vector<48x128xf32>, vector<128x128xf32>, vector<48x128xf32> -> vector<48x128xf32>
    %cst_38 = arith.constant dense<0.000000e+00> : vector<48x128xf32>
    %28 = tpu.matmul %26, %5, %cst_38 {dimension_numbers = #tpu.dot_dimension_numbers<[1], [0], [0], [1], [0, 0, 1, 1], [], []>} : vector<48x128xf32>, vector<128x128xf32>, vector<48x128xf32> -> vector<48x128xf32>
    %cst_39 = arith.constant dense<0.000000e+00> : vector<48x128xf32>
    %29 = tpu.matmul %26, %7, %cst_39 {dimension_numbers = #tpu.dot_dimension_numbers<[1], [0], [0], [1], [0, 0, 1, 1], [], []>} : vector<48x128xf32>, vector<128x128xf32>, vector<48x128xf32> -> vector<48x128xf32>
    %30 = vector.extract_strided_slice %27 {offsets = [0, 0], sizes = [47, 128], strides = [1, 1]} : vector<48x128xf32> to vector<47x128xf32>
    %31 = tpu.concatenate %1, %30 in 0 : vector<1x128xf32>, vector<47x128xf32> -> vector<48x128xf32>
    %32 = arith.addf %31, %28 : vector<48x128xf32>
    %33 = vector.extract_strided_slice %29 {offsets = [1, 0], sizes = [47, 128], strides = [1, 1]} : vector<48x128xf32> to vector<47x128xf32>
    %34 = tpu.concatenate %33, %1 in 0 : vector<47x128xf32>, vector<1x128xf32> -> vector<48x128xf32>
    %35 = arith.addf %32, %34 : vector<48x128xf32>
    %36 = vector.broadcast %20 : vector<1x128xf32> to vector<48x128xf32>
    %37 = arith.mulf %35, %36 : vector<48x128xf32>
    %38 = vector.broadcast %21 : vector<1x128xf32> to vector<48x128xf32>
    %39 = arith.addf %37, %38 : vector<48x128xf32>
    %40 = arith.mulf %39, %0 : vector<48x128xf32>
    %cst_40 = arith.constant dense<0.000000e+00> : vector<48x128xf32>
    %41 = tpu.matmul %40, %9, %cst_40 {dimension_numbers = #tpu.dot_dimension_numbers<[1], [0], [0], [1], [0, 0, 1, 1], [], []>} : vector<48x128xf32>, vector<128x128xf32>, vector<48x128xf32> -> vector<48x128xf32>
    %cst_41 = arith.constant dense<0.000000e+00> : vector<48x128xf32>
    %42 = tpu.matmul %40, %11, %cst_41 {dimension_numbers = #tpu.dot_dimension_numbers<[1], [0], [0], [1], [0, 0, 1, 1], [], []>} : vector<48x128xf32>, vector<128x128xf32>, vector<48x128xf32> -> vector<48x128xf32>
    %cst_42 = arith.constant dense<0.000000e+00> : vector<48x128xf32>
    %43 = tpu.matmul %40, %13, %cst_42 {dimension_numbers = #tpu.dot_dimension_numbers<[1], [0], [0], [1], [0, 0, 1, 1], [], []>} : vector<48x128xf32>, vector<128x128xf32>, vector<48x128xf32> -> vector<48x128xf32>
    %44 = vector.extract_strided_slice %41 {offsets = [0, 0], sizes = [47, 128], strides = [1, 1]} : vector<48x128xf32> to vector<47x128xf32>
    %45 = tpu.concatenate %1, %44 in 0 : vector<1x128xf32>, vector<47x128xf32> -> vector<48x128xf32>
    %46 = arith.addf %45, %42 : vector<48x128xf32>
    %47 = vector.extract_strided_slice %43 {offsets = [1, 0], sizes = [47, 128], strides = [1, 1]} : vector<48x128xf32> to vector<47x128xf32>
    %48 = tpu.concatenate %47, %1 in 0 : vector<47x128xf32>, vector<1x128xf32> -> vector<48x128xf32>
    %49 = arith.addf %46, %48 : vector<48x128xf32>
    %50 = vector.broadcast %22 : vector<1x128xf32> to vector<48x128xf32>
    %51 = arith.mulf %49, %50 : vector<48x128xf32>
    %52 = vector.broadcast %23 : vector<1x128xf32> to vector<48x128xf32>
    %53 = arith.addf %51, %52 : vector<48x128xf32>
    %cst_43 = arith.constant 0.000000e+00 : f32
    %54 = vector.broadcast %cst_43 : f32 to vector<48x128xf32>
    %55 = arith.maximumf %53, %54 : vector<48x128xf32>
    %56 = arith.mulf %55, %0 : vector<48x128xf32>
    %57 = arith.addf %40, %56 : vector<48x128xf32>
    %cst_44 = arith.constant dense<0.000000e+00> : vector<48x128xf32>
    %58 = tpu.matmul %57, %9, %cst_44 {dimension_numbers = #tpu.dot_dimension_numbers<[1], [0], [0], [1], [0, 0, 1, 1], [], []>} : vector<48x128xf32>, vector<128x128xf32>, vector<48x128xf32> -> vector<48x128xf32>
    %cst_45 = arith.constant dense<0.000000e+00> : vector<48x128xf32>
    %59 = tpu.matmul %57, %11, %cst_45 {dimension_numbers = #tpu.dot_dimension_numbers<[1], [0], [0], [1], [0, 0, 1, 1], [], []>} : vector<48x128xf32>, vector<128x128xf32>, vector<48x128xf32> -> vector<48x128xf32>
    %cst_46 = arith.constant dense<0.000000e+00> : vector<48x128xf32>
    %60 = tpu.matmul %57, %13, %cst_46 {dimension_numbers = #tpu.dot_dimension_numbers<[1], [0], [0], [1], [0, 0, 1, 1], [], []>} : vector<48x128xf32>, vector<128x128xf32>, vector<48x128xf32> -> vector<48x128xf32>
    %61 = vector.extract_strided_slice %58 {offsets = [0, 0], sizes = [47, 128], strides = [1, 1]} : vector<48x128xf32> to vector<47x128xf32>
    %62 = tpu.concatenate %1, %61 in 0 : vector<1x128xf32>, vector<47x128xf32> -> vector<48x128xf32>
    %63 = arith.addf %62, %59 : vector<48x128xf32>
    %64 = vector.extract_strided_slice %60 {offsets = [1, 0], sizes = [47, 128], strides = [1, 1]} : vector<48x128xf32> to vector<47x128xf32>
    %65 = tpu.concatenate %64, %1 in 0 : vector<47x128xf32>, vector<1x128xf32> -> vector<48x128xf32>
    %66 = arith.addf %63, %65 : vector<48x128xf32>
    %67 = vector.broadcast %22 : vector<1x128xf32> to vector<48x128xf32>
    %68 = arith.mulf %66, %67 : vector<48x128xf32>
    %69 = vector.broadcast %23 : vector<1x128xf32> to vector<48x128xf32>
    %70 = arith.addf %68, %69 : vector<48x128xf32>
    %cst_47 = arith.constant 0.000000e+00 : f32
    %71 = vector.broadcast %cst_47 : f32 to vector<48x128xf32>
    %72 = arith.maximumf %70, %71 : vector<48x128xf32>
    %73 = arith.mulf %72, %0 : vector<48x128xf32>
    %cst_48 = arith.constant dense<0.000000e+00> : vector<48x128xf32>
    %74 = tpu.matmul %73, %15, %cst_48 {dimension_numbers = #tpu.dot_dimension_numbers<[1], [0], [0], [1], [0, 0, 1, 1], [], []>} : vector<48x128xf32>, vector<128x128xf32>, vector<48x128xf32> -> vector<48x128xf32>
    %cst_49 = arith.constant dense<0.000000e+00> : vector<48x128xf32>
    %75 = tpu.matmul %73, %17, %cst_49 {dimension_numbers = #tpu.dot_dimension_numbers<[1], [0], [0], [1], [0, 0, 1, 1], [], []>} : vector<48x128xf32>, vector<128x128xf32>, vector<48x128xf32> -> vector<48x128xf32>
    %cst_50 = arith.constant dense<0.000000e+00> : vector<48x128xf32>
    %76 = tpu.matmul %73, %19, %cst_50 {dimension_numbers = #tpu.dot_dimension_numbers<[1], [0], [0], [1], [0, 0, 1, 1], [], []>} : vector<48x128xf32>, vector<128x128xf32>, vector<48x128xf32> -> vector<48x128xf32>
    %77 = vector.extract_strided_slice %74 {offsets = [0, 0], sizes = [47, 128], strides = [1, 1]} : vector<48x128xf32> to vector<47x128xf32>
    %78 = tpu.concatenate %1, %77 in 0 : vector<1x128xf32>, vector<47x128xf32> -> vector<48x128xf32>
    %79 = arith.addf %78, %75 : vector<48x128xf32>
    %80 = vector.extract_strided_slice %76 {offsets = [1, 0], sizes = [47, 128], strides = [1, 1]} : vector<48x128xf32> to vector<47x128xf32>
    %81 = tpu.concatenate %80, %1 in 0 : vector<47x128xf32>, vector<1x128xf32> -> vector<48x128xf32>
    %82 = arith.addf %79, %81 : vector<48x128xf32>
    %83 = vector.broadcast %24 : vector<1x128xf32> to vector<48x128xf32>
    %84 = arith.mulf %82, %83 : vector<48x128xf32>
    %85 = vector.broadcast %25 : vector<1x128xf32> to vector<48x128xf32>
    %86 = arith.addf %84, %85 : vector<48x128xf32>
    %cst_51 = arith.constant 0.000000e+00 : f32
    %87 = vector.broadcast %cst_51 : f32 to vector<48x128xf32>
    %88 = arith.maximumf %86, %87 : vector<48x128xf32>
    %89 = arith.mulf %88, %0 : vector<48x128xf32>
    %90 = arith.addf %73, %89 : vector<48x128xf32>
    %cst_52 = arith.constant dense<0.000000e+00> : vector<48x128xf32>
    %91 = tpu.matmul %90, %15, %cst_52 {dimension_numbers = #tpu.dot_dimension_numbers<[1], [0], [0], [1], [0, 0, 1, 1], [], []>} : vector<48x128xf32>, vector<128x128xf32>, vector<48x128xf32> -> vector<48x128xf32>
    %cst_53 = arith.constant dense<0.000000e+00> : vector<48x128xf32>
    %92 = tpu.matmul %90, %17, %cst_53 {dimension_numbers = #tpu.dot_dimension_numbers<[1], [0], [0], [1], [0, 0, 1, 1], [], []>} : vector<48x128xf32>, vector<128x128xf32>, vector<48x128xf32> -> vector<48x128xf32>
    %cst_54 = arith.constant dense<0.000000e+00> : vector<48x128xf32>
    %93 = tpu.matmul %90, %19, %cst_54 {dimension_numbers = #tpu.dot_dimension_numbers<[1], [0], [0], [1], [0, 0, 1, 1], [], []>} : vector<48x128xf32>, vector<128x128xf32>, vector<48x128xf32> -> vector<48x128xf32>
    %94 = vector.extract_strided_slice %91 {offsets = [0, 0], sizes = [47, 128], strides = [1, 1]} : vector<48x128xf32> to vector<47x128xf32>
    %95 = tpu.concatenate %1, %94 in 0 : vector<1x128xf32>, vector<47x128xf32> -> vector<48x128xf32>
    %96 = arith.addf %95, %92 : vector<48x128xf32>
    %97 = vector.extract_strided_slice %93 {offsets = [1, 0], sizes = [47, 128], strides = [1, 1]} : vector<48x128xf32> to vector<47x128xf32>
    %98 = tpu.concatenate %97, %1 in 0 : vector<47x128xf32>, vector<1x128xf32> -> vector<48x128xf32>
    %99 = arith.addf %96, %98 : vector<48x128xf32>
    %100 = vector.broadcast %24 : vector<1x128xf32> to vector<48x128xf32>
    %101 = arith.mulf %99, %100 : vector<48x128xf32>
    %102 = vector.broadcast %25 : vector<1x128xf32> to vector<48x128xf32>
    %103 = arith.addf %101, %102 : vector<48x128xf32>
    %cst_55 = arith.constant 0.000000e+00 : f32
    %104 = vector.broadcast %cst_55 : f32 to vector<48x128xf32>
    %105 = arith.maximumf %103, %104 : vector<48x128xf32>
    %106 = arith.mulf %105, %0 : vector<48x128xf32>
    %c0_56 = arith.constant 0 : index
    %c0_57 = arith.constant 0 : index
    %107 = vector.load %arg7[%c0_56, %c0_57] : memref<48x128xf32, #tpu.memory_space<vmem>>, vector<48x128xf32>
    tpu.vector_store %arg7[%c0_56, %c0_57], %106 {strides = array<i32>} : memref<48x128xf32, #tpu.memory_space<vmem>>, vector<48x128xf32>,
    return
  }
  func.func @transform_0(%arg0: i32) -> (i32, i32) {
    %c0_i32 = arith.constant 0 : i32
    %c0_i32_0 = arith.constant 0 : i32
    return %arg0, %c0_i32 : i32, i32
  }
  func.func @transform_1(%arg0: i32) -> (i32, i32) {
    %c0_i32 = arith.constant 0 : i32
    %c0_i32_0 = arith.constant 0 : i32
    %c0_i32_1 = arith.constant 0 : i32
    return %c0_i32, %c0_i32_0 : i32, i32
  }
  func.func @transform_2(%arg0: i32) -> (i32, i32, i32) {
    %c0_i32 = arith.constant 0 : i32
    %c0_i32_0 = arith.constant 0 : i32
    %c0_i32_1 = arith.constant 0 : i32
    %c0_i32_2 = arith.constant 0 : i32
    return %c0_i32, %c0_i32_0, %c0_i32_1 : i32, i32, i32
  }
  func.func @transform_3(%arg0: i32) -> (i32, i32, i32) {
    %c0_i32 = arith.constant 0 : i32
    %c0_i32_0 = arith.constant 0 : i32
    %c0_i32_1 = arith.constant 0 : i32
    %c0_i32_2 = arith.constant 0 : i32
    return %c0_i32, %c0_i32_0, %c0_i32_1 : i32, i32, i32
  }
  func.func @transform_4(%arg0: i32) -> (i32, i32, i32) {
    %c0_i32 = arith.constant 0 : i32
    %c0_i32_0 = arith.constant 0 : i32
    %c0_i32_1 = arith.constant 0 : i32
    %c0_i32_2 = arith.constant 0 : i32
    return %c0_i32, %c0_i32_0, %c0_i32_1 : i32, i32, i32
  }
  func.func @transform_5(%arg0: i32) -> (i32, i32) {
    %c0_i32 = arith.constant 0 : i32
    %c0_i32_0 = arith.constant 0 : i32
    %c0_i32_1 = arith.constant 0 : i32
    return %c0_i32, %c0_i32_0 : i32, i32
  }
  func.func @transform_6(%arg0: i32) -> (i32, i32) {
    %c0_i32 = arith.constant 0 : i32
    %c0_i32_0 = arith.constant 0 : i32
    return %arg0, %c0_i32 : i32, i32
  }
}

</mosaic_0001>

<bundles_post_ra>
// kernel: mul.5
= control target key start
LH: loop header
LB: loop body
LE: loop exit
PB: predicated region body
PF: predicated region fallthrough
CT: control target
= control target key end

     0   :  { %s80_s0 = inlined_call_operand.vmem [shape: f32[48], index: 0, kind: input, shape index: {}]   ;;  %s81_s1 = inlined_call_operand.vmem [shape: f32[48,128], index: 1, kind: output, shape index: {}]  }
   0x1   :  { %v16_v0 = vld [vmem:[%s80_s0] ss:$0 sm:$0xff] }
   0x2   :  { %19 = vbcast.lane.b32.xlu1 %v16_v0, 272  ;;  %6 = vbcast.lane.b32.xlu0 %v16_v0, 256 }
   0x6   :  { %26 = vbcast.lane.b32.xlu1 %v16_v0, 280  ;;  %12 = vbcast.lane.b32.xlu0 %v16_v0, 264 }
   0xa   :  { %40 = vbcast.lane.b32.xlu1 %v16_v0, 296  ;;  %33 = vbcast.lane.b32.xlu0 %v16_v0, 288 }
  0x74   :  { %v20_v1 = vpop.permute.xlu1 %19  ;;  %v7_v2 = vpop.permute.xlu0 %6 }
  0x75   :  { %45 = vst [vmem:[%s81_s1 + $0x10] sm:$0xff] %v20_v1  ;;  %8 = vst [vmem:[%s81_s1] sm:$0xff] %v7_v2 }
  0x78   :  { %v27_v3 = vpop.permute.xlu1 %26  ;;  %v13_v4 = vpop.permute.xlu0 %12 }
  0x79   :  { %46 = vst [vmem:[%s81_s1 + $0x18] sm:$0xff] %v27_v3  ;;  %44 = vst [vmem:[%s81_s1 + $0x8] sm:$0xff] %v13_v4 }
  0x7c   :  { %v41_v5 = vpop.permute.xlu1 %40  ;;  %v34_v6 = vpop.permute.xlu0 %33 }
  0x7d   :  { %48 = vst [vmem:[%s81_s1 + $0x28] sm:$0xff] %v41_v5  ;;  %47 = vst [vmem:[%s81_s1 + $0x20] sm:$0xff] %v34_v6 }

// kernel: tile.8
= control target key start
LH: loop header
LB: loop body
LE: loop exit
PB: predicated region body
PF: predicated region fallthrough
CT: control target
= control target key end

     0   :  { %s22_s0 = inlined_call_operand.vmem [shape: f32[24], index: 0, kind: input, shape index: {}]   ;;  %s23_s1 = inlined_call_operand.vmem [shape: f32[2,24], index: 1, kind: output, shape index: {}]  }
   0x1   :  { %v4_v0 = vld [vmem:[%s22_s0] ss:$0 sm:$0xff] }
   0x2   :  { %5 = vst [vmem:[%s23_s1] sm:$0x3] %v4_v0 }

// kernel: mul.4
= control target key start
LH: loop header
LB: loop body
LE: loop exit
PB: predicated region body
PF: predicated region fallthrough
CT: control target
= control target key end

     0   :  { %vm7_vm0 = vcmask 195584   ;;  %vm13_vm1 = vcmask 392384   ;;  %s39_s0 = inlined_call_operand.vmem [shape: f32[2,24], index: 0, kind: input, shape index: {}]   ;;  %s40_s1 = inlined_call_operand.vmem [shape: f32[48], index: 1, kind: output, shape index: {}]  }
   0x1   :  { %v4_v0 = vld [vmem:[%s39_s0] sm:$0x3]  ;;  %s22_s0 = smov 24  }
   0x2   :  { %5 = vst [vmem:[#allocation1] sm:$0x3] %v4_v0 }
   0x9   :  { %v10_v1 = vld [vmem:[#allocation1 + $0x1] sm:$0x1]   ;;  %v6_v2 = vld [vmem:[#allocation1] sm:$0x1]  }
   0xa   :  { %11 = vrot.lane.b32.xlu0 %v10_v1, %s22_s0  ;;  %8 = vst.msk [vmem:[#allocation0] sm:$0x1] %vm7_vm0, %v6_v2  }
  0x7c   :  { %v12_v3 = vpop.permute.xlu0 %11  }
  0x7d   :  { %14 = vst.msk [vmem:[#allocation0] sm:$0x1] %vm13_vm1, %v12_v3  }
  0x84   :  { %v18_v4 = vld [vmem:[#allocation0] sm:$0x1] }
  0x85   :  { %20 = vst [vmem:[%s40_s1] sm:$0x1] %v18_v4 }

// kernel: r2block_forward.1
= control target key start
LH: loop header
LB: loop body
LE: loop exit
PB: predicated region body
PF: predicated region fallthrough
CT: control target
= control target key end

     0   :  { %11 = vsyncpa [#allocation3], 0  ;;  %s4493_s0 = inlined_call_operand.vmem [shape: f32[48,128], index: 0, kind: input, shape index: {}]   ;;  %s4494_s1 = inlined_call_operand.vmem [shape: f32[48,128], index: 1, kind: input, shape index: {}]   ;;  %s4495_s2 = inlined_call_operand.vmem [shape: f32[3,128,128], index: 2, kind: input, shape index: {}]   ;;  %s4496_s3 = inlined_call_operand.hbm [shape: f32[3,128,128], index: 3, kind: input, shape index: {}]   ;;  %s4497_s4 = inlined_call_operand.hbm [shape: f32[3,128,128], index: 4, kind: input, shape index: {}]   ;;  %s4498_s5 = inlined_call_operand.vmem [shape: f32[6,128], index: 5, kind: input, shape index: {}]   ;;  %s4499_s6 = inlined_call_operand.vmem [shape: f32[48,128], index: 6, kind: output, shape index: {}]  }
   0x1   :  { %12 = vsyncpa [#allocation5], 0  ;;  %s3645_s21 = smov [#allocation2]   ;;  %s3597_s25 = scalar_lea.hbm %s4496_s3, 6144 }
   0x2   :  { %s24_s22 = sshll.u32 %s3645_s21, 4  ;;  %p3598_p0 = scmp.ne.s32.totalorder %s4496_s3, %s3597_s25  ;;  %s25_s22 = int_to_ptr.vmem [resolvable:$true] %s24_s22 }
   0x3   :  { %p3601_p1 = scmp.lt.u32.totalorder %s3597_s25, %s4496_s3 }
   0x5   :  { %p3603_p2 = pnand %p3601_p1, %p3598_p0 }
   0x7   :  { %3606 = shalt.err (!%p3603_p2)
}
   0x8   :  { %s3607_s30 = scalar_lea.vmem %s25_s22, 6144  ;;  %p3612_p4 = scmp.lt.s32.totalorder %s25_s22, %s25_s22 }
   0x9   :  { %p3608_p3 = scmp.ne.s32.totalorder %s25_s22, %s3607_s30  ;;  %p3613_p5 = scmp.lt.s32.totalorder %s3607_s30, %s3607_s30 }
   0xb   :  { %p3614_p6 = por %p3613_p5, %p3612_p4 }
   0xd   :  { %p3615_p7 = pnand %p3614_p6, %p3608_p3 }
   0xf   :  { %3618 = shalt.err (!%p3615_p7)
}
  0x10   :  { %s3646_s7 = smov 128   ;;  %s3647_s8 = smov 8  }
  0x11   :  { %30 = dma.hbm_to_vmem [thread:$0]  %s4496_s3, 6144, %s25_s22, [#allocation3], %s3646_s7, %s3646_s7, %s3647_s8  }
  0x12   :  { %s3648_s11 = smov [#allocation4]   ;;  %s3619_s15 = scalar_lea.hbm %s4497_s4, 6144 }
  0x13   :  { %s36_s12 = sshll.u32 %s3648_s11, 4  ;;  %p3620_p8 = scmp.ne.s32.totalorder %s4497_s4, %s3619_s15  ;;  %s37_s12 = int_to_ptr.vmem [resolvable:$true] %s36_s12 }
  0x14   :  { %p3623_p9 = scmp.lt.u32.totalorder %s3619_s15, %s4497_s4 }
  0x16   :  { %p3625_p10 = pnand %p3623_p9, %p3620_p8 }
  0x18   :  { %3628 = shalt.err (!%p3625_p10)
}
  0x19   :  { %s3629_s20 = scalar_lea.vmem %s37_s12, 6144  ;;  %p3634_p12 = scmp.lt.s32.totalorder %s37_s12, %s37_s12 }
  0x1a   :  { %p3630_p11 = scmp.ne.s32.totalorder %s37_s12, %s3629_s20  ;;  %p3635_p13 = scmp.lt.s32.totalorder %s3629_s20, %s3629_s20 }
  0x1c   :  { %p3636_p0 = por %p3635_p13, %p3634_p12 }
  0x1e   :  { %p3637_p1 = pnand %p3636_p0, %p3630_p11 }
  0x20   :  { %3640 = shalt.err (!%p3637_p1)
}
  0x21   :  { %42 = dma.hbm_to_vmem [thread:$0]  %s4497_s4, 6144, %s37_s12, [#allocation5], %s3646_s7, %s3646_s7, %s3647_s8  }
  0x22   :  { %3641 = dma.done.wait [#allocation3], 6144  }
  0x23   :  { %3642 = vsyncadd [#allocation3], 4294961152 }
  0x24   :  { %3643 = dma.done.wait [#allocation5], 6144  }
  0x25   :  { %3644 = vsyncadd [#allocation5], 4294961152  ;;  %v57_v0 = vld [vmem:[%s4495_s2] sm:$0xff]  ;;  %v58_v1 = vld [vmem:[%s4495_s2 + $0x8] sm:$0xff]  ;;  %vm510_vm0 = vcmask 1040384   ;;  %vm541_vm1 = vcmask 1046528  }
  0x26   :  { %v2108_v2 = vld [vmem:[%s4495_s2 + $0x80] sm:$0xff]  ;;  %v3091_v3 = vpack.c.bf16 %v58_v1, %v57_v0  ;;  %v2109_v4 = vld [vmem:[%s4495_s2 + $0x88] sm:$0xff]  ;;  %v59_v5 = vld [vmem:[%s4495_s2 + $0x10] sm:$0xff] }
  0x27   :  { %v60_v6 = vld [vmem:[%s4495_s2 + $0x18] sm:$0xff]  ;;  %v3123_v7 = vpack.c.bf16 %v2109_v4, %v2108_v2  ;;  %v2110_v9 = vld [vmem:[%s4495_s2 + $0x90] sm:$0xff]  ;;  %v61_v11 = vld [vmem:[%s4495_s2 + $0x20] sm:$0xff] }
  0x28   :  { %v3095_v8 = vpack.c.bf16 %v60_v6, %v59_v5  ;;  %v2111_v10 = vld [vmem:[%s4495_s2 + $0x98] sm:$0xff]  ;;  %3092 = vmatprep.subr.bf16.mxu0 %v3091_v3  ;;  %v62_v13 = vld [vmem:[%s4495_s2 + $0x28] sm:$0xff]  ;;  %v2112_v14 = vld [vmem:[%s4495_s2 + $0xa0] sm:$0xff] }
  0x29   :  { %v3127_v12 = vpack.c.bf16 %v2111_v10, %v2110_v9  ;;  %v2113_v15 = vld [vmem:[%s4495_s2 + $0xa8] sm:$0xff]  ;;  %3094 = vmatpush3.bf16.msra.mxu0 %v3091_v3  ;;  %3124 = vmatprep.subr.bf16.mxu1 %v3123_v7  ;;  %v3099_v16 = vpack.c.bf16 %v62_v13, %v61_v11  ;;  %v63_v18 = vld [vmem:[%s4495_s2 + $0x30] sm:$0xff]  ;;  %v64_v19 = vld [vmem:[%s4495_s2 + $0x38] sm:$0xff] }
  0x2a   :  { %3096 = vmatprep.subr.bf16.mxu0 %v3095_v8  ;;  %3126 = vmatpush3.bf16.msra.mxu1 %v3123_v7  ;;  %v3131_v17 = vpack.c.bf16 %v2113_v15, %v2112_v14  ;;  %v2114_v20 = vld [vmem:[%s4495_s2 + $0xb0] sm:$0xff]  ;;  %v2115_v21 = vld [vmem:[%s4495_s2 + $0xb8] sm:$0xff]  ;;  %v3103_v22 = vpack.c.bf16 %v64_v19, %v63_v18  ;;  %v65_v24 = vld [vmem:[%s4495_s2 + $0x40] sm:$0xff] }
  0x2b   :  { %3128 = vmatprep.subr.bf16.mxu1 %v3127_v12  ;;  %v3135_v23 = vpack.c.bf16 %v2115_v21, %v2114_v20  ;;  %v66_v25 = vld [vmem:[%s4495_s2 + $0x48] sm:$0xff]  ;;  %v3765_v26 = vld [vmem:[%s4493_s0] sm:$0xff]  ;;  %v67_v31 = vld [vmem:[%s4495_s2 + $0x50] sm:$0xff] }
  0x2c   :  { %v2116_v27 = vld [vmem:[%s4495_s2 + $0xc0] sm:$0xff]  ;;  %v2117_v28 = vld [vmem:[%s4495_s2 + $0xc8] sm:$0xff]  ;;  %2508 = vmatprep.mubr.f32.mxu0 %v3765_v26  ;;  %2549 = vmatprep.mubr.f32.mxu1 %v3765_v26  ;;  %v3107_v29 = vpack.c.bf16 %v66_v25, %v65_v24  ;;  %v68_v32 = vld [vmem:[%s4495_s2 + $0x58] sm:$0xff] }
  0x2d   :  { %3098 = vmatpush3.bf16.msra.mxu0 %v3095_v8  ;;  %v3139_v30 = vpack.c.bf16 %v2117_v28, %v2116_v27  ;;  %v2118_v33 = vld [vmem:[%s4495_s2 + $0xd0] sm:$0xff]  ;;  %v2119_v34 = vld [vmem:[%s4495_s2 + $0xd8] sm:$0xff]  ;;  %v3111_v35 = vpack.c.bf16 %v68_v32, %v67_v31  ;;  %v69_v37 = vld [vmem:[%s4495_s2 + $0x60] sm:$0xff] }
  0x2e   :  { %3100 = vmatprep.subr.bf16.mxu0 %v3099_v16  ;;  %3130 = vmatpush3.bf16.msra.mxu1 %v3127_v12  ;;  %v3143_v36 = vpack.c.bf16 %v2119_v34, %v2118_v33  ;;  %v70_v38 = vld [vmem:[%s4495_s2 + $0x68] sm:$0xff]  ;;  %v2120_v39 = vld [vmem:[%s4495_s2 + $0xe0] sm:$0xff]  ;;  %v71_v43 = vld [vmem:[%s4495_s2 + $0x70] sm:$0xff] }
  0x2f   :  { %3132 = vmatprep.subr.bf16.mxu1 %v3131_v17  ;;  %v2121_v40 = vld [vmem:[%s4495_s2 + $0xe8] sm:$0xff]  ;;  %v3115_v41 = vpack.c.bf16 %v70_v38, %v69_v37  ;;  %v72_v44 = vld [vmem:[%s4495_s2 + $0x78] sm:$0xff]  ;;  %v2122_v45 = vld [vmem:[%s4495_s2 + $0xf0] sm:$0xff] }
  0x30   :  { %v3147_v42 = vpack.c.bf16 %v2121_v40, %v2120_v39  ;;  %v2123_v46 = vld [vmem:[%s4495_s2 + $0xf8] sm:$0xff]  ;;  %v3119_v47 = vpack.c.bf16 %v72_v44, %v71_v43  ;;  %v2124_v49 = vld [vmem:[%s4495_s2 + $0x100] sm:$0xff]  ;;  %v2125_v50 = vld [vmem:[%s4495_s2 + $0x108] sm:$0xff] }
  0x31   :  { %3102 = vmatpush3.bf16.msra.mxu0 %v3099_v16  ;;  %v3151_v48 = vpack.c.bf16 %v2123_v46, %v2122_v45  ;;  %v3155_v51 = vpack.c.bf16 %v2125_v50, %v2124_v49  ;;  %v2126_v52 = vld [vmem:[%s4495_s2 + $0x110] sm:$0xff]  ;;  %v2127_v53 = vld [vmem:[%s4495_s2 + $0x118] sm:$0xff]  ;;  %v214_v54 = vld [vmem:[%s4493_s0 + $0x8] sm:$0xff] }
  0x32   :  { %3104 = vmatprep.subr.bf16.mxu0 %v3103_v22  ;;  %3134 = vmatpush3.bf16.msra.mxu1 %v3131_v17  ;;  %v215_v55 = vld [vmem:[%s4493_s0 + $0x10] sm:$0xff]  ;;  %v3159_v56 = vpack.c.bf16 %v2127_v53, %v2126_v52  ;;  %v2128_v57 = vld [vmem:[%s4495_s2 + $0x120] sm:$0xff]  ;;  %v2129_v58 = vld [vmem:[%s4495_s2 + $0x128] sm:$0xff] }
  0x33   :  { %3136 = vmatprep.subr.bf16.mxu1 %v3135_v23  ;;  %v216_v59 = vld [vmem:[%s4493_s0 + $0x18] sm:$0xff]  ;;  %v3163_v60 = vpack.c.bf16 %v2129_v58, %v2128_v57  ;;  %v217_v61 = vld [vmem:[%s4493_s0 + $0x20] sm:$0xff]  ;;  %v2130_v62 = vld [vmem:[%s4495_s2 + $0x130] sm:$0xff] }
  0x34   :  { %v2131_v63 = vld [vmem:[%s4495_s2 + $0x138] sm:$0xff]  ;;  %v218_v0 = vld [vmem:[%s4493_s0 + $0x28] sm:$0xff]  ;;  %v2132_v2 = vld [vmem:[%s4495_s2 + $0x140] sm:$0xff] }
  0x35   :  { %3106 = vmatpush3.bf16.msra.mxu0 %v3103_v22  ;;  %v3167_v1 = vpack.c.bf16 %v2131_v63, %v2130_v62  ;;  %v2133_v3 = vld [vmem:[%s4495_s2 + $0x148] sm:$0xff]  ;;  %v2134_v5 = vld [vmem:[%s4495_s2 + $0x150] sm:$0xff]  ;;  %v2135_v6 = vld [vmem:[%s4495_s2 + $0x158] sm:$0xff] }
  0x36   :  { %3108 = vmatprep.subr.bf16.mxu0 %v3107_v29  ;;  %3138 = vmatpush3.bf16.msra.mxu1 %v3135_v23  ;;  %v3171_v4 = vpack.c.bf16 %v2133_v3, %v2132_v2  ;;  %v3175_v7 = vpack.c.bf16 %v2135_v6, %v2134_v5  ;;  %v2136_v8 = vld [vmem:[%s4495_s2 + $0x160] sm:$0xff]  ;;  %v2137_v9 = vld [vmem:[%s4495_s2 + $0x168] sm:$0xff]  ;;  %v2138_v11 = vld [vmem:[%s4495_s2 + $0x170] sm:$0xff] }
  0x37   :  { %3140 = vmatprep.subr.bf16.mxu1 %v3139_v30  ;;  %v3179_v10 = vpack.c.bf16 %v2137_v9, %v2136_v8  ;;  %v2139_v12 = vld [vmem:[%s4495_s2 + $0x178] sm:$0xff]  ;;  %v107_v14 = vld [vmem:[#allocation2] sm:$0xff]  ;;  %v108_v15 = vld [vmem:[#allocation2 + $0x8] sm:$0xff] }
  0x38   :  { %v3183_v13 = vpack.c.bf16 %v2139_v12, %v2138_v11  ;;  %v124_v16 = vld [vmem:[#allocation2 + $0x80] sm:$0xff]  ;;  %v3875_v17 = vpack.c.bf16 %v108_v15, %v107_v14  ;;  %v125_v18 = vld [vmem:[#allocation2 + $0x88] sm:$0xff]  ;;  %v109_v19 = vld [vmem:[#allocation2 + $0x10] sm:$0xff] }
  0x39   :  { %3110 = vmatpush3.bf16.msra.mxu0 %v3107_v29  ;;  %v110_v20 = vld [vmem:[#allocation2 + $0x18] sm:$0xff]  ;;  %v3877_v21 = vpack.c.bf16 %v125_v18, %v124_v16  ;;  %v126_v23 = vld [vmem:[#allocation2 + $0x90] sm:$0xff]  ;;  %v111_v25 = vld [vmem:[#allocation2 + $0x20] sm:$0xff] }
  0x3a   :  { %3112 = vmatprep.subr.bf16.mxu0 %v3111_v35  ;;  %3142 = vmatpush3.bf16.msra.mxu1 %v3139_v30  ;;  %v3879_v22 = vpack.c.bf16 %v110_v20, %v109_v19  ;;  %v127_v24 = vld [vmem:[#allocation2 + $0x98] sm:$0xff]  ;;  %v112_v27 = vld [vmem:[#allocation2 + $0x28] sm:$0xff]  ;;  %v128_v28 = vld [vmem:[#allocation2 + $0xa0] sm:$0xff] }
  0x3b   :  { %3144 = vmatprep.subr.bf16.mxu1 %v3143_v36  ;;  %v129_v29 = vld [vmem:[#allocation2 + $0xa8] sm:$0xff]  ;;  %v3888_v30 = vpack.c.bf16 %v112_v27, %v111_v25  ;;  %v113_v32 = vld [vmem:[#allocation2 + $0x30] sm:$0xff]  ;;  %v114_v33 = vld [vmem:[#allocation2 + $0x38] sm:$0xff] }
  0x3c   :  { %v3891_v31 = vpack.c.bf16 %v129_v29, %v128_v28  ;;  %v130_v34 = vld [vmem:[#allocation2 + $0xb0] sm:$0xff]  ;;  %v115_v38 = vld [vmem:[#allocation2 + $0x40] sm:$0xff]  ;;  %v116_v39 = vld [vmem:[#allocation2 + $0x48] sm:$0xff] }
  0x3d   :  { %3114 = vmatpush3.bf16.msra.mxu0 %v3111_v35  ;;  %v131_v35 = vld [vmem:[#allocation2 + $0xb8] sm:$0xff]  ;;  %v3907_v40 = vpack.c.bf16 %v116_v39, %v115_v38  ;;  %v117_v44 = vld [vmem:[#allocation2 + $0x50] sm:$0xff]  ;;  %v119_v50 = vld [vmem:[#allocation2 + $0x60] sm:$0xff] }
  0x3e   :  { %3116 = vmatprep.subr.bf16.mxu0 %v3115_v41  ;;  %3146 = vmatpush3.bf16.msra.mxu1 %v3143_v36  ;;  %v3896_v36 = vpack.c.bf16 %v114_v33, %v113_v32  ;;  %v3899_v37 = vpack.c.bf16 %v131_v35, %v130_v34  ;;  %v118_v45 = vld [vmem:[#allocation2 + $0x58] sm:$0xff]  ;;  %v136_v53 = vld [vmem:[#allocation2 + $0xe0] sm:$0xff]  ;;  %v142_v63 = vld [vmem:[#allocation2 + $0x108] sm:$0xff] }
  0x3f   :  { %3148 = vmatprep.subr.bf16.mxu1 %v3147_v42  ;;  %v3915_v46 = vpack.c.bf16 %v118_v45, %v117_v44  ;;  %v122_v57 = vld [vmem:[#allocation2 + $0x78] sm:$0xff]  ;;  %v141_v62 = vld [vmem:[#allocation2 + $0x100] sm:$0xff] }
  0x40   :  { %v2140_v45 = vld [vmem:[%s4498_s5] ss:$0 sm:$0xff] }
  0x41   :  { %3118 = vmatpush3.bf16.msra.mxu0 %v3115_v41  ;;  %v132_v41 = vld [vmem:[#allocation2 + $0xc0] sm:$0xff] }
  0x42   :  { %3120 = vmatprep.subr.bf16.mxu0 %v3119_v47  ;;  %3150 = vmatpush3.bf16.msra.mxu1 %v3147_v42  ;;  %v133_v42 = vld [vmem:[#allocation2 + $0xc8] sm:$0xff] }
  0x43   :  { %3152 = vmatprep.subr.bf16.mxu1 %v3151_v48  ;;  %v3909_v43 = vpack.c.bf16 %v133_v42, %v132_v41 }
  0x45   :  { %3122 = vmatpush3.bf16.msra.mxu0 %v3119_v47  ;;  %v134_v47 = vld [vmem:[#allocation2 + $0xd0] sm:$0xff] }
  0x46   :  { %3154 = vmatpush3.bf16.msra.mxu1 %v3151_v48  ;;  %3156 = vmatprep.subr.bf16.mxu0 %v3155_v51  ;;  %v135_v48 = vld [vmem:[#allocation2 + $0xd8] sm:$0xff] }
  0x47   :  { %3188 = vmatprep.subr.bf16.mxu1 %v3875_v17  ;;  %v3917_v49 = vpack.c.bf16 %v135_v48, %v134_v47 }
  0x48   :  { %2509 = vmatmul.mubr.f32.vlgmr.msra.gmra.mrb[0].mxu0 %v214_v54 }
  0x49   :  { %3158 = vmatpush3.bf16.msra.mxu0 %v3155_v51  ;;  %2511 = vmatprep.mubr.f32.mxu0 %v215_v55  ;;  %v120_v51 = vld [vmem:[#allocation2 + $0x68] sm:$0xff] }
  0x4a   :  { %2550 = vmatmul.mubr.f32.vlgmr.msra.gmra.mrb[0].mxu1 %v214_v54  ;;  %3160 = vmatprep.subr.bf16.mxu0 %v3159_v56  ;;  %v3923_v52 = vpack.c.bf16 %v120_v51, %v119_v50 }
  0x4b   :  { %2552 = vmatprep.mubr.f32.mxu1 %v215_v55  ;;  %3190 = vmatpush3.bf16.msra.mxu1 %v3875_v17 }
  0x4c   :  { %2512 = vmatmul.mubr.f32.gmra.mrb[2].mxu0 %v216_v59  ;;  %3192 = vmatprep.subr.bf16.mxu1 %v3879_v22 }
  0x4d   :  { %3162 = vmatpush3.bf16.msra.mxu0 %v3159_v56  ;;  %2514 = vmatprep.mubr.f32.mxu0 %v217_v61  ;;  %v121_v56 = vld [vmem:[#allocation2 + $0x70] sm:$0xff] }
  0x4e   :  { %2553 = vmatmul.mubr.f32.gmra.mrb[2].mxu1 %v216_v59  ;;  %3164 = vmatprep.subr.bf16.mxu0 %v3163_v60  ;;  %v3931_v58 = vpack.c.bf16 %v122_v57, %v121_v56 }
  0x4f   :  { %2555 = vmatprep.mubr.f32.mxu1 %v217_v61  ;;  %3194 = vmatpush3.bf16.msra.mxu1 %v3879_v22 }
  0x50   :  { %2515 = vmatmul.mubr.f32.gmra.mrb[4].mxu0 %v218_v0  ;;  %3196 = vmatprep.subr.bf16.mxu1 %v3888_v30 }
  0x51   :  { %3166 = vmatpush3.bf16.msra.mxu0 %v3163_v60  ;;  %2590 = vmatprep.mubr.f32.mxu0 %v3765_v26  ;;  %v3882_v26 = vpack.c.bf16 %v127_v24, %v126_v23  ;;  %v139_v60 = vld [vmem:[#allocation2 + $0xf8] sm:$0xff] }
  0x52   :  { %3168 = vmatprep.subr.bf16.mxu0 %v3167_v1  ;;  %2556 = vmatmul.mubr.f32.gmra.mrb[4].mxu1 %v218_v0 }
  0x53   :  { %3198 = vmatpush3.bf16.msra.mxu1 %v3888_v30 }
  0x54   :  { %3200 = vmatprep.subr.bf16.mxu1 %v3896_v36 }
  0x55   :  { %3170 = vmatpush3.bf16.msra.mxu0 %v3167_v1 }
  0x56   :  { %3172 = vmatprep.subr.bf16.mxu0 %v3171_v4 }
  0x57   :  { %3202 = vmatpush3.bf16.msra.mxu1 %v3896_v36 }
  0x58   :  { %3204 = vmatprep.subr.bf16.mxu1 %v3907_v40 }
  0x59   :  { %3174 = vmatpush3.bf16.msra.mxu0 %v3171_v4 }
  0x5a   :  { %3176 = vmatprep.subr.bf16.mxu0 %v3175_v7 }
  0x5b   :  { %3206 = vmatpush3.bf16.msra.mxu1 %v3907_v40 }
  0x5c   :  { %3208 = vmatprep.subr.bf16.mxu1 %v3915_v46 }
  0x5d   :  { %3178 = vmatpush3.bf16.msra.mxu0 %v3175_v7 }
  0x5e   :  { %3180 = vmatprep.subr.bf16.mxu0 %v3179_v10 }
  0x5f   :  { %3210 = vmatpush3.bf16.msra.mxu1 %v3915_v46 }
  0x60   :  { %3212 = vmatprep.subr.bf16.mxu1 %v3923_v52 }
  0x61   :  { %3182 = vmatpush3.bf16.msra.mxu0 %v3179_v10 }
  0x62   :  { %3184 = vmatprep.subr.bf16.mxu0 %v3183_v13 }
  0x63   :  { %3214 = vmatpush3.bf16.msra.mxu1 %v3923_v52 }
  0x64   :  { %3216 = vmatprep.subr.bf16.mxu1 %v3931_v58 }
  0x65   :  { %3186 = vmatpush3.bf16.msra.mxu0 %v3183_v13 }
  0x66   :  { %3220 = vmatprep.subr.bf16.mxu0 %v3877_v21 }
  0x67   :  { %3218 = vmatpush3.bf16.msra.mxu1 %v3931_v58 }
  0x68   :  { %2591 = vmatmul.mubr.f32.vlgmr.msra.gmra.mrb[6].mxu0 %v214_v54  ;;  %v137_v54 = vld [vmem:[#allocation2 + $0xe8] sm:$0xff] }
  0x69   :  { %2593 = vmatprep.mubr.f32.mxu0 %v215_v55  ;;  %3222 = vmatpush3.bf16.msra.mxu0 %v3877_v21  ;;  %v3925_v55 = vpack.c.bf16 %v137_v54, %v136_v53  ;;  %v2141_v54 = vld [vmem:[%s4498_s5 + $0x1] ss:$0 sm:$0xff] }
  0x6a   :  { %3224 = vmatprep.subr.bf16.mxu0 %v3882_v26 }
  0x6c   :  { %2594 = vmatmul.mubr.f32.gmra.mrb[8].mxu0 %v216_v59  ;;  %v138_v59 = vld [vmem:[#allocation2 + $0xf0] sm:$0xff] }
  0x6d   :  { %2596 = vmatprep.mubr.f32.mxu0 %v217_v61  ;;  %3226 = vmatpush3.bf16.msra.mxu0 %v3882_v26  ;;  %v3933_v61 = vpack.c.bf16 %v139_v60, %v138_v59 }
  0x6e   :  { %3228 = vmatprep.subr.bf16.mxu0 %v3891_v31 }
  0x70   :  { %2597 = vmatmul.mubr.f32.gmra.mrb[10].mxu0 %v218_v0  ;;  %v3939_v0 = vpack.c.bf16 %v142_v63, %v141_v62  ;;  %v3961_v63 = vld [vmem:[%s4494_s1] sm:$0xff] }
  0x71   :  { %3230 = vmatpush3.bf16.msra.mxu0 %v3891_v31 }
  0x72   :  { %3232 = vmatprep.subr.bf16.mxu0 %v3899_v37  ;;  %3252 = vmatprep.subr.bf16.mxu1 %v3939_v0 }
  0x75   :  { %3234 = vmatpush3.bf16.msra.mxu0 %v3899_v37 }
  0x76   :  { %3236 = vmatprep.subr.bf16.mxu0 %v3909_v43 }
  0x79   :  { %3238 = vmatpush3.bf16.msra.mxu0 %v3909_v43 }
  0x7a   :  { %3240 = vmatprep.subr.bf16.mxu0 %v3917_v49 }
  0x7d   :  { %3242 = vmatpush3.bf16.msra.mxu0 %v3917_v49 }
  0x7e   :  { %3244 = vmatprep.subr.bf16.mxu0 %v3925_v55 }
  0x81   :  { %3246 = vmatpush3.bf16.msra.mxu0 %v3925_v55 }
  0x82   :  { %3248 = vmatprep.subr.bf16.mxu0 %v3933_v61 }
  0x85   :  { %3250 = vmatpush3.bf16.msra.mxu0 %v3933_v61 }
  0x86   :  { %3284 = vmatprep.subr.bf16.mxu0 %v3875_v17 }
 0x11b   :  { %v2510_v1 = vpop.f32.mrb[0].mxu0 }
 0x11c   :  { %v512_v2 = vrot.slane %v2510_v1, 7  ;;  %v285_v3 = vpop.f32.mrb[1].mxu0 }
 0x11d   :  { %v511_v4 = vrot.slane %v285_v3, 7  ;;  %v2551_v5 = vpop.f32.mrb[0].mxu1 }
 0x11e   :  { %v380_v6 = vpop.f32.mrb[1].mxu1 }
 0x11f   :  { %v513_v7 = vsel %vm510_vm0, %v511_v4, %v512_v2  ;;  %v2513_v8 = vpop.f32.mrb[2].mxu0  ;;  %v528_v9 = vsel %vm510_vm0, 0.0, %v511_v4 }
 0x120   :  { %v530_v10 = vadd.f32 %v2551_v5, %v513_v7  ;;  %v516_v11 = vrot.slane %v2513_v8, 7  ;;  %v529_v12 = vadd.f32 %v528_v9, %v380_v6  ;;  %v295_v13 = vpop.f32.mrb[3].mxu0 }
 0x121   :  { %v514_v14 = vrot.slane %v295_v13, 7  ;;  %v2554_v15 = vpop.f32.mrb[2].mxu1  ;;  %v144_v13 = vld [vmem:[#allocation2 + $0x118] sm:$0xff] }
 0x122   :  { %v390_v16 = vpop.f32.mrb[3].mxu1 }
 0x123   :  { %v517_v18 = vsel %vm510_vm0, %v514_v14, %v516_v11  ;;  %v515_v19 = vsel %vm510_vm0, %v512_v2, %v514_v14  ;;  %v2516_v20 = vpop.f32.mrb[4].mxu0 }
 0x124   :  { %v532_v23 = vadd.f32 %v2554_v15, %v517_v18  ;;  %v531_v24 = vadd.f32 %v515_v19, %v390_v16  ;;  %v520_v25 = vrot.slane %v2516_v20, 7  ;;  %v305_v27 = vpop.f32.mrb[5].mxu0 }
 0x125   :  { %v518_v28 = vrot.slane %v305_v27, 7  ;;  %v2557_v29 = vpop.f32.mrb[4].mxu1 }
 0x126   :  { %v400_v32 = vpop.f32.mrb[5].mxu1 }
 0x127   :  { %v521_v33 = vsel %vm510_vm0, %v518_v28, %v520_v25  ;;  %v519_v34 = vsel %vm510_vm0, %v516_v11, %v518_v28 }
 0x128   :  { %v534_v35 = vadd.f32 %v2557_v29, %v521_v33  ;;  %v533_v38 = vadd.f32 %v519_v34, %v400_v32  ;;  %v146_v34 = vld [vmem:[#allocation2 + $0x128] sm:$0xff] }
 0x13b   :  { %v2592_v39 = vpop.f32.mrb[6].mxu0 }
 0x13c   :  { %v543_v41 = vrot.slane %v2592_v39, 1  ;;  %v475_v42 = vpop.f32.mrb[7].mxu0  ;;  %v3997_v39 = vld [vmem:[%s4494_s1 + $0x20] sm:$0xff] }
 0x13d   :  { %v542_v44 = vrot.slane %v475_v42, 1 }
 0x13f   :  { %v544_v47 = vsel %vm541_vm1, %v542_v44, %v543_v41  ;;  %v2595_v48 = vpop.f32.mrb[8].mxu0 }
 0x140   :  { %v560_v50 = vadd.f32 %v544_v47, %v529_v12  ;;  %v547_v51 = vrot.slane %v2595_v48, 1  ;;  %v485_v53 = vpop.f32.mrb[9].mxu0  ;;  %v143_v12 = vld [vmem:[#allocation2 + $0x110] sm:$0xff] }
 0x141   :  { %v545_v56 = vrot.slane %v485_v53, 1  ;;  %v3981_v27 = vpack.c.bf16 %v144_v13, %v143_v12  ;;  %v148_v53 = vld [vmem:[#allocation2 + $0x138] sm:$0xff] }
 0x142   :  { %v570_v57 = vmul.f32 %v2140_v45, %v560_v50  ;;  %v4016_v50 = vld [vmem:[%s4494_s1 + $0x28] sm:$0xff] }
 0x143   :  { %v546_v59 = vsel %vm541_vm1, %v543_v41, %v545_v56  ;;  %v548_v60 = vsel %vm541_vm1, %v545_v56, %v547_v51  ;;  %v2598_v62 = vpop.f32.mrb[10].mxu0 }
 0x144   :  { %v561_v1 = vadd.f32 %v546_v59, %v530_v10  ;;  %v562_v2 = vadd.f32 %v548_v60, %v531_v24  ;;  %v551_v3 = vrot.slane %v2598_v62, 1  ;;  %v495_v4 = vpop.f32.mrb[11].mxu0  ;;  %v580_v5 = vadd.f32 %v2141_v54, %v570_v57  ;;  %v3972_v10 = vld [vmem:[%s4494_s1 + $0x8] sm:$0xff]  ;;  %v3979_v24 = vld [vmem:[%s4494_s1 + $0x10] sm:$0xff]  ;;  %v149_v57 = vld [vmem:[#allocation2 + $0x140] sm:$0xff] }
 0x145   :  { %v549_v6 = vrot.slane %v495_v4, 1  ;;  %v150_v59 = vld [vmem:[#allocation2 + $0x148] sm:$0xff]  ;;  %v151_v60 = vld [vmem:[#allocation2 + $0x150] sm:$0xff]  ;;  %v152_v62 = vld [vmem:[#allocation2 + $0x158] sm:$0xff] }
 0x146   :  { %v571_v7 = vmul.f32 %v2140_v45, %v561_v1  ;;  %v572_v8 = vmul.f32 %v2140_v45, %v562_v2  ;;  %v559_v9 = vsel %vm541_vm1, %v551_v3, 0.0  ;;  %v3965_v11 = vmul.f32 %v580_v5, %v3961_v63  ;;  %v153_v2 = vld [vmem:[#allocation2 + $0x160] sm:$0xff]  ;;  %v155_v4 = vld [vmem:[#allocation2 + $0x170] sm:$0xff]  ;;  %v156_v5 = vld [vmem:[#allocation2 + $0x178] sm:$0xff] }
 0x147   :  { %v565_v14 = vadd.f32 %v559_v9, %v534_v35  ;;  %v550_v15 = vsel %vm541_vm1, %v547_v51, %v549_v6  ;;  %v552_v16 = vsel %vm541_vm1, %v549_v6, %v551_v3  ;;  %v147_v51 = vld [vmem:[#allocation2 + $0x130] sm:$0xff]  ;;  %v4042_v1 = vpack.c.bf16 %v152_v62, %v151_v60  ;;  %v154_v3 = vld [vmem:[#allocation2 + $0x168] sm:$0xff] }
 0x148   :  { %v581_v18 = vadd.f32 %v2141_v54, %v571_v7  ;;  %v563_v19 = vadd.f32 %v550_v15, %v532_v23  ;;  %v564_v20 = vadd.f32 %v552_v16, %v533_v38  ;;  %2631 = vmatprep.mubr.f32.mxu1 %v3965_v11  ;;  %2672 = vmatprep.mubr.f32.mxu0 %v3965_v11  ;;  %v145_v23 = vld [vmem:[#allocation2 + $0x120] sm:$0xff]  ;;  %v3992_v38 = vld [vmem:[%s4494_s1 + $0x18] sm:$0xff] }
 0x149   :  { %v582_v25 = vadd.f32 %v2141_v54, %v572_v8  ;;  %v575_v28 = vmul.f32 %v2140_v45, %v565_v14  ;;  %v4003_v44 = vpack.c.bf16 %v146_v34, %v145_v23  ;;  %v4028_v56 = vpack.c.bf16 %v148_v53, %v147_v51  ;;  %v4097_v51 = vld [vmem:[%s4498_s5 + $0x2] ss:$0 sm:$0xff] }
 0x14a   :  { %v573_v29 = vmul.f32 %v2140_v45, %v563_v19  ;;  %v574_v32 = vmul.f32 %v2140_v45, %v564_v20  ;;  %v3984_v33 = vmul.f32 %v581_v18, %v3972_v10 }
 0x14b   :  { %v3987_v35 = vmul.f32 %v582_v25, %v3979_v24  ;;  %v585_v45 = vadd.f32 %v2141_v54, %v575_v28 }
 0x14c   :  { %2632 = vmatmul.mubr.f32.vlgmr.msra.gmra.mrb[6].mxu1 %v3984_v33  ;;  %2673 = vmatmul.mubr.f32.vlgmr.msra.gmra.mrb[12].mxu0 %v3984_v33  ;;  %v583_v41 = vadd.f32 %v2141_v54, %v573_v29  ;;  %v584_v42 = vadd.f32 %v2141_v54, %v574_v32 }
 0x14d   :  { %3254 = vmatpush3.bf16.msra.mxu1 %v3939_v0  ;;  %2634 = vmatprep.mubr.f32.mxu1 %v3987_v35  ;;  %v4026_v54 = vmul.f32 %v585_v45, %v4016_v50 }
 0x14e   :  { %2675 = vmatprep.mubr.f32.mxu0 %v3987_v35  ;;  %3256 = vmatprep.subr.bf16.mxu1 %v3981_v27  ;;  %v4008_v47 = vmul.f32 %v583_v41, %v3992_v38  ;;  %v4011_v48 = vmul.f32 %v584_v42, %v3997_v39 }
 0x14f   :  { %3286 = vmatpush3.bf16.msra.mxu0 %v3875_v17  ;;  %v4036_v17 = vpack.c.bf16 %v150_v59, %v149_v57 }
 0x150   :  { %2635 = vmatmul.mubr.f32.gmra.mrb[8].mxu1 %v4008_v47  ;;  %2676 = vmatmul.mubr.f32.gmra.mrb[14].mxu0 %v4008_v47 }
 0x151   :  { %3258 = vmatpush3.bf16.msra.mxu1 %v3981_v27  ;;  %2637 = vmatprep.mubr.f32.mxu1 %v4011_v48 }
 0x152   :  { %2678 = vmatprep.mubr.f32.mxu0 %v4011_v48  ;;  %3260 = vmatprep.subr.bf16.mxu1 %v4003_v44 }
 0x153   :  { %3288 = vmatprep.subr.bf16.mxu0 %v3879_v22 }
 0x154   :  { %2638 = vmatmul.mubr.f32.gmra.mrb[10].mxu1 %v4026_v54  ;;  %2679 = vmatmul.mubr.f32.gmra.mrb[16].mxu0 %v4026_v54 }
 0x155   :  { %3262 = vmatpush3.bf16.msra.mxu1 %v4003_v44  ;;  %2713 = vmatprep.mubr.f32.mxu1 %v3965_v11 }
 0x156   :  { %3264 = vmatprep.subr.bf16.mxu1 %v4028_v56  ;;  %3290 = vmatpush3.bf16.msra.mxu0 %v3879_v22  ;;  %v4048_v22 = vpack.c.bf16 %v154_v3, %v153_v2  ;;  %v4103_v2 = vld [vmem:[%s4498_s5 + $0x3] ss:$0 sm:$0xff] }
 0x157   :  { %3292 = vmatprep.subr.bf16.mxu0 %v3888_v30 }
 0x159   :  { %3266 = vmatpush3.bf16.msra.mxu1 %v4028_v56 }
 0x15a   :  { %3268 = vmatprep.subr.bf16.mxu1 %v4036_v17  ;;  %3294 = vmatpush3.bf16.msra.mxu0 %v3888_v30  ;;  %v4054_v30 = vpack.c.bf16 %v156_v5, %v155_v4 }
 0x15b   :  { %3296 = vmatprep.subr.bf16.mxu0 %v3896_v36 }
 0x15d   :  { %3270 = vmatpush3.bf16.msra.mxu1 %v4036_v17 }
 0x15e   :  { %3272 = vmatprep.subr.bf16.mxu1 %v4042_v1  ;;  %3298 = vmatpush3.bf16.msra.mxu0 %v3896_v36 }
 0x15f   :  { %3300 = vmatprep.subr.bf16.mxu0 %v3907_v40 }
 0x161   :  { %3274 = vmatpush3.bf16.msra.mxu1 %v4042_v1 }
 0x162   :  { %3276 = vmatprep.subr.bf16.mxu1 %v4048_v22  ;;  %3302 = vmatpush3.bf16.msra.mxu0 %v3907_v40 }
 0x163   :  { %3304 = vmatprep.subr.bf16.mxu0 %v3915_v46 }
 0x165   :  { %3278 = vmatpush3.bf16.msra.mxu1 %v4048_v22 }
 0x166   :  { %3280 = vmatprep.subr.bf16.mxu1 %v4054_v30  ;;  %3306 = vmatpush3.bf16.msra.mxu0 %v3915_v46 }
 0x167   :  { %3308 = vmatprep.subr.bf16.mxu0 %v3923_v52 }
 0x169   :  { %3282 = vmatpush3.bf16.msra.mxu1 %v4054_v30 }
 0x16a   :  { %3316 = vmatprep.subr.bf16.mxu1 %v3877_v21  ;;  %3310 = vmatpush3.bf16.msra.mxu0 %v3923_v52 }
 0x16b   :  { %3312 = vmatprep.subr.bf16.mxu0 %v3931_v58 }
 0x16c   :  { %2714 = vmatmul.mubr.f32.vlgmr.msra.gmra.mrb[12].mxu1 %v3984_v33 }
 0x16d   :  { %2716 = vmatprep.mubr.f32.mxu1 %v3987_v35  ;;  %3318 = vmatpush3.bf16.msra.mxu1 %v3877_v21 }
 0x16e   :  { %3320 = vmatprep.subr.bf16.mxu1 %v3882_v26  ;;  %3314 = vmatpush3.bf16.msra.mxu0 %v3931_v58 }
 0x16f   :  { %3348 = vmatprep.subr.bf16.mxu0 %v3939_v0 }
 0x170   :  { %2717 = vmatmul.mubr.f32.gmra.mrb[14].mxu1 %v4008_v47 }
 0x171   :  { %2719 = vmatprep.mubr.f32.mxu1 %v4011_v48  ;;  %3322 = vmatpush3.bf16.msra.mxu1 %v3882_v26 }
 0x172   :  { %3324 = vmatprep.subr.bf16.mxu1 %v3891_v31 }
 0x174   :  { %2720 = vmatmul.mubr.f32.gmra.mrb[16].mxu1 %v4026_v54 }
 0x175   :  { %3326 = vmatpush3.bf16.msra.mxu1 %v3891_v31 }
 0x176   :  { %3328 = vmatprep.subr.bf16.mxu1 %v3899_v37 }
 0x179   :  { %3330 = vmatpush3.bf16.msra.mxu1 %v3899_v37 }
 0x17a   :  { %3332 = vmatprep.subr.bf16.mxu1 %v3909_v43 }
 0x17d   :  { %3334 = vmatpush3.bf16.msra.mxu1 %v3909_v43 }
 0x17e   :  { %3336 = vmatprep.subr.bf16.mxu1 %v3917_v49 }
 0x181   :  { %3338 = vmatpush3.bf16.msra.mxu1 %v3917_v49 }
 0x182   :  { %3340 = vmatprep.subr.bf16.mxu1 %v3925_v55 }
 0x185   :  { %3342 = vmatpush3.bf16.msra.mxu1 %v3925_v55 }
 0x186   :  { %3344 = vmatprep.subr.bf16.mxu1 %v3933_v61 }
 0x189   :  { %3346 = vmatpush3.bf16.msra.mxu1 %v3933_v61 }
 0x21f   :  { %v2633_v21 = vpop.f32.mrb[6].mxu1  ;;  %v2674_v26 = vpop.f32.mrb[12].mxu0 }
 0x220   :  { %v884_v31 = vrot.slane %v2633_v21, 7  ;;  %v658_v36 = vpop.f32.mrb[7].mxu1  ;;  %v753_v37 = vpop.f32.mrb[13].mxu0 }
 0x221   :  { %v883_v40 = vrot.slane %v658_v36, 7 }
 0x223   :  { %v885_v43 = vsel %vm510_vm0, %v883_v40, %v884_v31  ;;  %v900_v46 = vsel %vm510_vm0, 0.0, %v883_v40  ;;  %v2636_v52 = vpop.f32.mrb[8].mxu1  ;;  %v2677_v49 = vpop.f32.mrb[14].mxu0 }
 0x224   :  { %v902_v58 = vadd.f32 %v2674_v26, %v885_v43  ;;  %v901_v6 = vadd.f32 %v900_v46, %v753_v37  ;;  %v888_v7 = vrot.slane %v2636_v52, 7  ;;  %v668_v55 = vpop.f32.mrb[9].mxu1  ;;  %v763_v8 = vpop.f32.mrb[15].mxu0 }
 0x225   :  { %v886_v9 = vrot.slane %v668_v55, 7 }
 0x227   :  { %v889_v61 = vsel %vm510_vm0, %v886_v9, %v888_v7  ;;  %v887_v12 = vsel %vm510_vm0, %v884_v31, %v886_v9  ;;  %v2639_v13 = vpop.f32.mrb[10].mxu1  ;;  %v2680_v14 = vpop.f32.mrb[16].mxu0 }
 0x228   :  { %v904_v15 = vadd.f32 %v2677_v49, %v889_v61  ;;  %v903_v16 = vadd.f32 %v887_v12, %v763_v8  ;;  %v892_v18 = vrot.slane %v2639_v13, 7  ;;  %v678_v19 = vpop.f32.mrb[11].mxu1  ;;  %v773_v20 = vpop.f32.mrb[17].mxu0 }
 0x229   :  { %v890_v25 = vrot.slane %v678_v19, 7 }
 0x22b   :  { %v893_v28 = vsel %vm510_vm0, %v890_v25, %v892_v18  ;;  %v891_v29 = vsel %vm510_vm0, %v888_v7, %v890_v25 }
 0x22c   :  { %v905_v32 = vadd.f32 %v891_v29, %v773_v20  ;;  %v906_v23 = vadd.f32 %v2680_v14, %v893_v28 }
 0x23f   :  { %v2715_v34 = vpop.f32.mrb[12].mxu1 }
 0x240   :  { %v914_v41 = vrot.slane %v2715_v34, 1  ;;  %v848_v42 = vpop.f32.mrb[13].mxu1 }
 0x241   :  { %v913_v45 = vrot.slane %v848_v42, 1 }
 0x243   :  { %v915_v53 = vsel %vm541_vm1, %v913_v45, %v914_v41  ;;  %v2718_v57 = vpop.f32.mrb[14].mxu1 }
 0x244   :  { %v931_v59 = vadd.f32 %v915_v53, %v901_v6  ;;  %v918_v60 = vrot.slane %v2718_v57, 1  ;;  %v858_v62 = vpop.f32.mrb[15].mxu1 }
 0x245   :  { %v916_v3 = vrot.slane %v858_v62, 1 }
 0x246   :  { %v941_v4 = vmul.f32 %v4097_v51, %v931_v59 }
 0x247   :  { %v917_v5 = vsel %vm541_vm1, %v914_v41, %v916_v3  ;;  %v919_v21 = vsel %vm541_vm1, %v916_v3, %v918_v60  ;;  %v2721_v26 = vpop.f32.mrb[16].mxu1  ;;  %v177_v3 = vld [vmem:[#allocation4 + $0x98] sm:$0xff] }
 0x248   :  { %v932_v31 = vadd.f32 %v917_v5, %v902_v58  ;;  %v933_v36 = vadd.f32 %v919_v21, %v903_v16  ;;  %v922_v37 = vrot.slane %v2721_v26, 1  ;;  %v868_v40 = vpop.f32.mrb[17].mxu1  ;;  %v951_v43 = vadd.f32 %v4103_v2, %v941_v4  ;;  %v162_v5 = vld [vmem:[#allocation4 + $0x28] sm:$0xff]  ;;  %v178_v21 = vld [vmem:[#allocation4 + $0xa0] sm:$0xff] }
 0x249   :  { %v920_v46 = vrot.slane %v868_v40, 1  ;;  %v179_v26 = vld [vmem:[#allocation4 + $0xa8] sm:$0xff]  ;;  %v164_v40 = vld [vmem:[#allocation4 + $0x38] sm:$0xff] }
 0x24a   :  { %v942_v52 = vmul.f32 %v4097_v51, %v932_v31  ;;  %v943_v49 = vmul.f32 %v4097_v51, %v933_v36  ;;  %v930_v6 = vsel %vm541_vm1, %v922_v37, 0.0  ;;  %v957_v7 = vmax.f32 %v951_v43, 0.0  ;;  %v180_v43 = vld [vmem:[#allocation4 + $0xb0] sm:$0xff] }
 0x24b   :  { %v936_v55 = vadd.f32 %v930_v6, %v906_v23  ;;  %v921_v8 = vsel %vm541_vm1, %v918_v60, %v920_v46  ;;  %v923_v9 = vsel %vm541_vm1, %v920_v46, %v922_v37  ;;  %v4165_v36 = vpack.c.bf16 %v179_v26, %v178_v21  ;;  %v163_v37 = vld [vmem:[#allocation4 + $0x30] sm:$0xff]  ;;  %v181_v46 = vld [vmem:[#allocation4 + $0xb8] sm:$0xff]  ;;  %v165_v6 = vld [vmem:[#allocation4 + $0x40] sm:$0xff] }
 0x24c   :  { %v952_v58 = vadd.f32 %v4103_v2, %v942_v52  ;;  %v934_v61 = vadd.f32 %v921_v8, %v904_v15  ;;  %v935_v12 = vadd.f32 %v923_v9, %v905_v32  ;;  %v963_v13 = vmul.f32 %v957_v7, %v3961_v63  ;;  %v166_v7 = vld [vmem:[#allocation4 + $0x48] sm:$0xff]  ;;  %v182_v8 = vld [vmem:[#allocation4 + $0xc0] sm:$0xff] }
 0x24d   :  { %v946_v14 = vmul.f32 %v4097_v51, %v936_v55  ;;  %v953_v16 = vadd.f32 %v4103_v2, %v943_v49  ;;  %v4170_v52 = vpack.c.bf16 %v164_v40, %v163_v37  ;;  %v4173_v49 = vpack.c.bf16 %v181_v46, %v180_v43  ;;  %v183_v9 = vld [vmem:[#allocation4 + $0xc8] sm:$0xff] }
 0x24e   :  { %v958_v18 = vmax.f32 %v952_v58, 0.0  ;;  %v944_v19 = vmul.f32 %v4097_v51, %v934_v61  ;;  %v945_v20 = vmul.f32 %v4097_v51, %v935_v12  ;;  %v969_v25 = vadd.f32 %v963_v13, %v3965_v11  ;;  %v167_v61 = vld [vmem:[#allocation4 + $0x50] sm:$0xff]  ;;  %v168_v12 = vld [vmem:[#allocation4 + $0x58] sm:$0xff] }
 0x24f   :  { %v956_v28 = vadd.f32 %v4103_v2, %v946_v14  ;;  %v959_v29 = vmax.f32 %v953_v16, 0.0  ;;  %v4181_v55 = vpack.c.bf16 %v166_v7, %v165_v6  ;;  %v4183_v58 = vpack.c.bf16 %v183_v9, %v182_v8  ;;  %v184_v14 = vld [vmem:[#allocation4 + $0xd0] sm:$0xff]  ;;  %v185_v16 = vld [vmem:[#allocation4 + $0xd8] sm:$0xff] }
 0x250   :  { %v964_v23 = vmul.f32 %v958_v18, %v3972_v10  ;;  %2754 = vmatprep.mubr.f32.mxu0 %v969_v25  ;;  %2795 = vmatprep.mubr.f32.mxu1 %v969_v25  ;;  %v954_v15 = vadd.f32 %v4103_v2, %v944_v19  ;;  %v955_v32 = vadd.f32 %v4103_v2, %v945_v20  ;;  %v169_v19 = vld [vmem:[#allocation4 + $0x60] sm:$0xff]  ;;  %v170_v20 = vld [vmem:[#allocation4 + $0x68] sm:$0xff] }
 0x251   :  { %v965_v34 = vmul.f32 %v959_v29, %v3979_v24  ;;  %v962_v53 = vmax.f32 %v956_v28, 0.0  ;;  %v4189_v13 = vpack.c.bf16 %v168_v12, %v167_v61  ;;  %v4191_v18 = vpack.c.bf16 %v185_v16, %v184_v14  ;;  %v186_v28 = vld [vmem:[#allocation4 + $0xe0] sm:$0xff]  ;;  %v187_v29 = vld [vmem:[#allocation4 + $0xe8] sm:$0xff] }
 0x252   :  { %v970_v41 = vadd.f32 %v964_v23, %v3984_v33  ;;  %v960_v42 = vmax.f32 %v954_v15, 0.0  ;;  %v961_v45 = vmax.f32 %v955_v32, 0.0  ;;  %v4199_v23 = vpack.c.bf16 %v187_v29, %v186_v28  ;;  %v171_v15 = vld [vmem:[#allocation4 + $0x70] sm:$0xff]  ;;  %v172_v32 = vld [vmem:[#allocation4 + $0x78] sm:$0xff] }
 0x253   :  { %v971_v11 = vadd.f32 %v965_v34, %v3987_v35  ;;  %v968_v62 = vmul.f32 %v962_v53, %v4016_v50  ;;  %v158_v35 = vld [vmem:[#allocation4 + $0x8] sm:$0xff]  ;;  %v4205_v34 = vpack.c.bf16 %v172_v32, %v171_v15  ;;  %v191_v53 = vld [vmem:[#allocation4 + $0x100] sm:$0xff] }
 0x254   :  { %2755 = vmatmul.mubr.f32.vlgmr.msra.gmra.mrb[18].mxu0 %v970_v41  ;;  %2796 = vmatmul.mubr.f32.vlgmr.msra.gmra.mrb[18].mxu1 %v970_v41  ;;  %v966_v57 = vmul.f32 %v960_v42, %v3992_v38  ;;  %v967_v59 = vmul.f32 %v961_v45, %v3997_v39  ;;  %v189_v42 = vld [vmem:[#allocation4 + $0xf8] sm:$0xff] }
 0x255   :  { %3350 = vmatpush3.bf16.msra.mxu0 %v3939_v0  ;;  %2757 = vmatprep.mubr.f32.mxu0 %v971_v11  ;;  %v974_v0 = vadd.f32 %v968_v62, %v4026_v54  ;;  %v159_v54 = vld [vmem:[#allocation4 + $0x10] sm:$0xff] }
 0x256   :  { %2798 = vmatprep.mubr.f32.mxu1 %v971_v11  ;;  %3352 = vmatprep.subr.bf16.mxu0 %v3981_v27  ;;  %v972_v60 = vadd.f32 %v966_v57, %v4008_v47  ;;  %v973_v33 = vadd.f32 %v967_v59, %v4011_v48  ;;  %v175_v48 = vld [vmem:[#allocation4 + $0x88] sm:$0xff] }
 0x258   :  { %2758 = vmatmul.mubr.f32.gmra.mrb[20].mxu0 %v972_v60  ;;  %2799 = vmatmul.mubr.f32.gmra.mrb[20].mxu1 %v972_v60 }
 0x259   :  { %3354 = vmatpush3.bf16.msra.mxu0 %v3981_v27  ;;  %2760 = vmatprep.mubr.f32.mxu0 %v973_v33  ;;  %v157_v27 = vld [vmem:[#allocation4] sm:$0xff] }
 0x25a   :  { %2801 = vmatprep.mubr.f32.mxu1 %v973_v33  ;;  %3356 = vmatprep.subr.bf16.mxu0 %v4003_v44  ;;  %v4149_v47 = vpack.c.bf16 %v158_v35, %v157_v27 }
 0x25c   :  { %2761 = vmatmul.mubr.f32.gmra.mrb[22].mxu0 %v974_v0  ;;  %2802 = vmatmul.mubr.f32.gmra.mrb[22].mxu1 %v974_v0 }
 0x25d   :  { %3358 = vmatpush3.bf16.msra.mxu0 %v4003_v44  ;;  %2836 = vmatprep.mubr.f32.mxu0 %v969_v25  ;;  %v174_v44 = vld [vmem:[#allocation4 + $0x80] sm:$0xff]  ;;  %v4197_v25 = vpack.c.bf16 %v170_v20, %v169_v19 }
 0x25e   :  { %3360 = vmatprep.subr.bf16.mxu0 %v4028_v56  ;;  %3380 = vmatprep.subr.bf16.mxu1 %v4149_v47 }
 0x25f   :  { %3382 = vmatpush3.bf16.msra.mxu1 %v4149_v47 }
 0x261   :  { %3362 = vmatpush3.bf16.msra.mxu0 %v4028_v56  ;;  %v160_v56 = vld [vmem:[#allocation4 + $0x18] sm:$0xff] }
 0x262   :  { %3364 = vmatprep.subr.bf16.mxu0 %v4036_v17 }
 0x265   :  { %3366 = vmatpush3.bf16.msra.mxu0 %v4036_v17  ;;  %v4151_v17 = vpack.c.bf16 %v175_v48, %v174_v44 }
 0x266   :  { %3368 = vmatprep.subr.bf16.mxu0 %v4042_v1 }
 0x269   :  { %3370 = vmatpush3.bf16.msra.mxu0 %v4042_v1  ;;  %v4153_v1 = vpack.c.bf16 %v160_v56, %v159_v54 }
 0x26a   :  { %3372 = vmatprep.subr.bf16.mxu0 %v4048_v22 }
 0x26b   :  { %3384 = vmatprep.subr.bf16.mxu1 %v4153_v1 }
 0x26c   :  { %3386 = vmatpush3.bf16.msra.mxu1 %v4153_v1 }
 0x26d   :  { %3374 = vmatpush3.bf16.msra.mxu0 %v4048_v22  ;;  %v176_v22 = vld [vmem:[#allocation4 + $0x90] sm:$0xff] }
 0x26e   :  { %3376 = vmatprep.subr.bf16.mxu0 %v4054_v30  ;;  %v4156_v4 = vpack.c.bf16 %v177_v3, %v176_v22 }
 0x271   :  { %3378 = vmatpush3.bf16.msra.mxu0 %v4054_v30  ;;  %v161_v30 = vld [vmem:[#allocation4 + $0x20] sm:$0xff] }
 0x272   :  { %3412 = vmatprep.subr.bf16.mxu0 %v4151_v17  ;;  %v4162_v31 = vpack.c.bf16 %v162_v5, %v161_v30 }
 0x274   :  { %2837 = vmatmul.mubr.f32.vlgmr.msra.gmra.mrb[24].mxu0 %v970_v41  ;;  %3388 = vmatprep.subr.bf16.mxu1 %v4162_v31  ;;  %v188_v41 = vld [vmem:[#allocation4 + $0xf0] sm:$0xff] }
 0x275   :  { %2839 = vmatprep.mubr.f32.mxu0 %v971_v11  ;;  %3414 = vmatpush3.bf16.msra.mxu0 %v4151_v17  ;;  %v4207_v45 = vpack.c.bf16 %v189_v42, %v188_v41  ;;  %v192_v11 = vld [vmem:[#allocation4 + $0x108] sm:$0xff] }
 0x276   :  { %3416 = vmatprep.subr.bf16.mxu0 %v4156_v4  ;;  %3390 = vmatpush3.bf16.msra.mxu1 %v4162_v31  ;;  %v4213_v57 = vpack.c.bf16 %v192_v11, %v191_v53 }
 0x277   :  { %3392 = vmatprep.subr.bf16.mxu1 %v4170_v52 }
 0x278   :  { %2840 = vmatmul.mubr.f32.gmra.mrb[26].mxu0 %v972_v60 }
 0x279   :  { %2842 = vmatprep.mubr.f32.mxu0 %v973_v33  ;;  %3418 = vmatpush3.bf16.msra.mxu0 %v4156_v4 }
 0x27a   :  { %3420 = vmatprep.subr.bf16.mxu0 %v4165_v36  ;;  %3394 = vmatpush3.bf16.msra.mxu1 %v4170_v52 }
 0x27b   :  { %3396 = vmatprep.subr.bf16.mxu1 %v4181_v55 }
 0x27c   :  { %2843 = vmatmul.mubr.f32.gmra.mrb[28].mxu0 %v974_v0 }
 0x27d   :  { %3422 = vmatpush3.bf16.msra.mxu0 %v4165_v36 }
 0x27e   :  { %3424 = vmatprep.subr.bf16.mxu0 %v4173_v49  ;;  %3398 = vmatpush3.bf16.msra.mxu1 %v4181_v55 }
 0x27f   :  { %3400 = vmatprep.subr.bf16.mxu1 %v4189_v13 }
 0x281   :  { %3426 = vmatpush3.bf16.msra.mxu0 %v4173_v49 }
 0x282   :  { %3428 = vmatprep.subr.bf16.mxu0 %v4183_v58  ;;  %3402 = vmatpush3.bf16.msra.mxu1 %v4189_v13 }
 0x283   :  { %3404 = vmatprep.subr.bf16.mxu1 %v4197_v25 }
 0x285   :  { %3430 = vmatpush3.bf16.msra.mxu0 %v4183_v58 }
 0x286   :  { %3432 = vmatprep.subr.bf16.mxu0 %v4191_v18  ;;  %3406 = vmatpush3.bf16.msra.mxu1 %v4197_v25 }
 0x287   :  { %3408 = vmatprep.subr.bf16.mxu1 %v4205_v34 }
 0x289   :  { %3434 = vmatpush3.bf16.msra.mxu0 %v4191_v18 }
 0x28a   :  { %3436 = vmatprep.subr.bf16.mxu0 %v4199_v23  ;;  %3410 = vmatpush3.bf16.msra.mxu1 %v4205_v34 }
 0x28b   :  { %3444 = vmatprep.subr.bf16.mxu1 %v4213_v57 }
 0x28d   :  { %3438 = vmatpush3.bf16.msra.mxu0 %v4199_v23 }
 0x28e   :  { %3440 = vmatprep.subr.bf16.mxu0 %v4207_v45 }
 0x291   :  { %3442 = vmatpush3.bf16.msra.mxu0 %v4207_v45 }
 0x292   :  { %3476 = vmatprep.subr.bf16.mxu0 %v4149_v47 }
 0x327   :  { %v2756_v59 = vpop.f32.mrb[18].mxu0  ;;  %v2797_v60 = vpop.f32.mrb[18].mxu1 }
 0x328   :  { %v1267_v33 = vrot.slane %v2756_v59, 7  ;;  %v1041_v62 = vpop.f32.mrb[19].mxu0  ;;  %v1136_v0 = vpop.f32.mrb[19].mxu1 }
 0x329   :  { %v1266_v27 = vrot.slane %v1041_v62, 7 }
 0x32b   :  { %v1268_v35 = vsel %vm510_vm0, %v1266_v27, %v1267_v33  ;;  %v1283_v44 = vsel %vm510_vm0, 0.0, %v1266_v27  ;;  %v2759_v48 = vpop.f32.mrb[20].mxu0  ;;  %v2800_v54 = vpop.f32.mrb[20].mxu1 }
 0x32c   :  { %v1285_v56 = vadd.f32 %v2797_v60, %v1268_v35  ;;  %v1284_v22 = vadd.f32 %v1283_v44, %v1136_v0  ;;  %v1271_v3 = vrot.slane %v2759_v48, 7  ;;  %v1051_v30 = vpop.f32.mrb[21].mxu0  ;;  %v1146_v5 = vpop.f32.mrb[21].mxu1 }
 0x32d   :  { %v1269_v21 = vrot.slane %v1051_v30, 7 }
 0x32f   :  { %v1272_v26 = vsel %vm510_vm0, %v1269_v21, %v1271_v3  ;;  %v1270_v37 = vsel %vm510_vm0, %v1267_v33, %v1269_v21  ;;  %v2762_v40 = vpop.f32.mrb[22].mxu0  ;;  %v2803_v43 = vpop.f32.mrb[22].mxu1 }
 0x330   :  { %v1287_v46 = vadd.f32 %v2800_v54, %v1272_v26  ;;  %v1286_v6 = vadd.f32 %v1270_v37, %v1146_v5  ;;  %v1275_v7 = vrot.slane %v2762_v40, 7  ;;  %v1061_v8 = vpop.f32.mrb[23].mxu0  ;;  %v1156_v9 = vpop.f32.mrb[23].mxu1 }
 0x331   :  { %v1273_v61 = vrot.slane %v1061_v8, 7  ;;  %v193_v8 = vld [vmem:[#allocation4 + $0x110] sm:$0xff] }
 0x333   :  { %v1276_v12 = vsel %vm510_vm0, %v1273_v61, %v1275_v7  ;;  %v1274_v14 = vsel %vm510_vm0, %v1271_v3, %v1273_v61 }
 0x334   :  { %v1288_v16 = vadd.f32 %v1274_v14, %v1156_v9  ;;  %v1289_v19 = vadd.f32 %v2803_v43, %v1276_v12  ;;  %v194_v9 = vld [vmem:[#allocation4 + $0x118] sm:$0xff] }
 0x347   :  { %v2838_v20 = vpop.f32.mrb[24].mxu0 }
 0x348   :  { %v1297_v28 = vrot.slane %v2838_v20, 1  ;;  %v1231_v29 = vpop.f32.mrb[25].mxu0 }
 0x349   :  { %v1296_v15 = vrot.slane %v1231_v29, 1 }
 0x34b   :  { %v1298_v32 = vsel %vm541_vm1, %v1296_v15, %v1297_v28  ;;  %v2841_v41 = vpop.f32.mrb[26].mxu0 }
 0x34c   :  { %v1314_v42 = vadd.f32 %v1298_v32, %v1284_v22  ;;  %v1301_v53 = vrot.slane %v2841_v41, 1  ;;  %v1241_v11 = vpop.f32.mrb[27].mxu0  ;;  %v196_v41 = vld [vmem:[#allocation4 + $0x128] sm:$0xff] }
 0x34d   :  { %v1299_v59 = vrot.slane %v1241_v11, 1 }
 0x34e   :  { %v1320_v60 = vmul.f32 %v4097_v51, %v1314_v42 }
 0x34f   :  { %v1300_v33 = vsel %vm541_vm1, %v1297_v28, %v1299_v59  ;;  %v1302_v62 = vsel %vm541_vm1, %v1299_v59, %v1301_v53  ;;  %v2844_v0 = vpop.f32.mrb[28].mxu0  ;;  %v197_v59 = vld [vmem:[#allocation4 + $0x130] sm:$0xff] }
 0x350   :  { %v1315_v27 = vadd.f32 %v1300_v33, %v1285_v56  ;;  %v1316_v35 = vadd.f32 %v1302_v62, %v1286_v6  ;;  %v1305_v44 = vrot.slane %v2844_v0, 1  ;;  %v1251_v48 = vpop.f32.mrb[29].mxu0  ;;  %v1326_v54 = vadd.f32 %v4103_v2, %v1320_v60  ;;  %v198_v60 = vld [vmem:[#allocation4 + $0x138] sm:$0xff]  ;;  %v199_v33 = vld [vmem:[#allocation4 + $0x140] sm:$0xff]  ;;  %v200_v62 = vld [vmem:[#allocation4 + $0x148] sm:$0xff] }
 0x351   :  { %v1303_v3 = vrot.slane %v1251_v48, 1  ;;  %v202_v0 = vld [vmem:[#allocation4 + $0x158] sm:$0xff]  ;;  %v205_v48 = vld [vmem:[#allocation4 + $0x170] sm:$0xff] }
 0x352   :  { %v1321_v30 = vmul.f32 %v4097_v51, %v1315_v27  ;;  %v1322_v22 = vmul.f32 %v4097_v51, %v1316_v35  ;;  %v1313_v5 = vsel %vm541_vm1, %v1305_v44, 0.0  ;;  %v1332_v21 = vmax.f32 %v1326_v54, 0.0  ;;  %v203_v35 = vld [vmem:[#allocation4 + $0x160] sm:$0xff]  ;;  %v206_v54 = vld [vmem:[#allocation4 + $0x178] sm:$0xff] }
 0x353   :  { %v1319_v26 = vadd.f32 %v1313_v5, %v1289_v19  ;;  %v1304_v37 = vsel %vm541_vm1, %v1301_v53, %v1303_v3  ;;  %v1306_v40 = vsel %vm541_vm1, %v1303_v3, %v1305_v44  ;;  %v204_v44 = vld [vmem:[#allocation4 + $0x168] sm:$0xff] }
 0x354   :  { %v1327_v56 = vadd.f32 %v4103_v2, %v1321_v30  ;;  %v1317_v43 = vadd.f32 %v1304_v37, %v1287_v46  ;;  %v1318_v6 = vadd.f32 %v1306_v40, %v1288_v16  ;;  %v4235_v7 = vmul.f32 %v1332_v21, %v3961_v63 }
 0x355   :  { %v1325_v61 = vmul.f32 %v4097_v51, %v1319_v26  ;;  %v1328_v12 = vadd.f32 %v4103_v2, %v1322_v22  ;;  %v4243_v16 = vpack.c.bf16 %v194_v9, %v193_v8 }
 0x356   :  { %v1333_v14 = vmax.f32 %v1327_v56, 0.0  ;;  %v1323_v19 = vmul.f32 %v4097_v51, %v1317_v43  ;;  %v1324_v20 = vmul.f32 %v4097_v51, %v1318_v6  ;;  %2877 = vmatprep.mubr.f32.mxu1 %v4235_v7  ;;  %2918 = vmatprep.mubr.f32.mxu0 %v4235_v7  ;;  %v195_v51 = vld [vmem:[#allocation4 + $0x120] sm:$0xff] }
 0x357   :  { %v1334_v46 = vmax.f32 %v1328_v12, 0.0  ;;  %v1331_v63 = vadd.f32 %v4103_v2, %v1325_v61  ;;  %v4266_v11 = vpack.c.bf16 %v196_v41, %v195_v51 }
 0x358   :  { %v4247_v28 = vmul.f32 %v1333_v14, %v3972_v10  ;;  %v1329_v29 = vadd.f32 %v4103_v2, %v1323_v19  ;;  %v1330_v15 = vadd.f32 %v4103_v2, %v1324_v20 }
 0x359   :  { %v4252_v32 = vmul.f32 %v1334_v46, %v3979_v24  ;;  %v1337_v10 = vmax.f32 %v1331_v63, 0.0 }
 0x35a   :  { %2878 = vmatmul.mubr.f32.vlgmr.msra.gmra.mrb[24].mxu1 %v4247_v28  ;;  %2919 = vmatmul.mubr.f32.vlgmr.msra.gmra.mrb[30].mxu0 %v4247_v28  ;;  %v1335_v42 = vmax.f32 %v1329_v29, 0.0  ;;  %v1336_v53 = vmax.f32 %v1330_v15, 0.0  ;;  %v4348_v15 = vld [vmem:[%s4498_s5 + $0x4] ss:$0 sm:$0xff] }
 0x35b   :  { %3446 = vmatpush3.bf16.msra.mxu1 %v4213_v57  ;;  %2880 = vmatprep.mubr.f32.mxu1 %v4252_v32 }
 0x35c   :  { %2921 = vmatprep.mubr.f32.mxu0 %v4252_v32  ;;  %3448 = vmatprep.subr.bf16.mxu1 %v4243_v16  ;;  %v4261_v24 = vmul.f32 %v1335_v42, %v3992_v38  ;;  %v4264_v2 = vmul.f32 %v1336_v53, %v3997_v39  ;;  %v4276_v38 = vmul.f32 %v1337_v10, %v4016_v50  ;;  %v201_v50 = vld [vmem:[#allocation4 + $0x150] sm:$0xff] }
 0x35d   :  { %3478 = vmatpush3.bf16.msra.mxu0 %v4149_v47  ;;  %v4278_v39 = vpack.c.bf16 %v198_v60, %v197_v59  ;;  %v4286_v47 = vpack.c.bf16 %v200_v62, %v199_v33  ;;  %v4292_v27 = vpack.c.bf16 %v202_v0, %v201_v50  ;;  %v4354_v59 = vld [vmem:[%s4498_s5 + $0x5] ss:$0 sm:$0xff] }
 0x35e   :  { %2881 = vmatmul.mubr.f32.gmra.mrb[26].mxu1 %v4261_v24  ;;  %2922 = vmatmul.mubr.f32.gmra.mrb[32].mxu0 %v4261_v24 }
 0x35f   :  { %3450 = vmatpush3.bf16.msra.mxu1 %v4243_v16  ;;  %2883 = vmatprep.mubr.f32.mxu1 %v4264_v2 }
 0x360   :  { %2924 = vmatprep.mubr.f32.mxu0 %v4264_v2  ;;  %3452 = vmatprep.subr.bf16.mxu1 %v4266_v11 }
 0x361   :  { %3480 = vmatprep.subr.bf16.mxu0 %v4153_v1 }
 0x362   :  { %2884 = vmatmul.mubr.f32.gmra.mrb[28].mxu1 %v4276_v38  ;;  %2925 = vmatmul.mubr.f32.gmra.mrb[34].mxu0 %v4276_v38 }
 0x363   :  { %3454 = vmatpush3.bf16.msra.mxu1 %v4266_v11  ;;  %2959 = vmatprep.mubr.f32.mxu1 %v4235_v7 }
 0x364   :  { %3456 = vmatprep.subr.bf16.mxu1 %v4278_v39  ;;  %3482 = vmatpush3.bf16.msra.mxu0 %v4153_v1  ;;  %v4298_v1 = vpack.c.bf16 %v204_v44, %v203_v35 }
 0x365   :  { %3484 = vmatprep.subr.bf16.mxu0 %v4162_v31 }
 0x367   :  { %3458 = vmatpush3.bf16.msra.mxu1 %v4278_v39 }
 0x368   :  { %3460 = vmatprep.subr.bf16.mxu1 %v4286_v47  ;;  %3486 = vmatpush3.bf16.msra.mxu0 %v4162_v31  ;;  %v4304_v31 = vpack.c.bf16 %v206_v54, %v205_v48 }
 0x369   :  { %3488 = vmatprep.subr.bf16.mxu0 %v4170_v52 }
 0x36b   :  { %3462 = vmatpush3.bf16.msra.mxu1 %v4286_v47 }
 0x36c   :  { %3464 = vmatprep.subr.bf16.mxu1 %v4292_v27  ;;  %3490 = vmatpush3.bf16.msra.mxu0 %v4170_v52 }
 0x36d   :  { %3492 = vmatprep.subr.bf16.mxu0 %v4181_v55 }
 0x36f   :  { %3466 = vmatpush3.bf16.msra.mxu1 %v4292_v27 }
 0x370   :  { %3468 = vmatprep.subr.bf16.mxu1 %v4298_v1  ;;  %3494 = vmatpush3.bf16.msra.mxu0 %v4181_v55 }
 0x371   :  { %3496 = vmatprep.subr.bf16.mxu0 %v4189_v13 }
 0x373   :  { %3470 = vmatpush3.bf16.msra.mxu1 %v4298_v1 }
 0x374   :  { %3472 = vmatprep.subr.bf16.mxu1 %v4304_v31  ;;  %3498 = vmatpush3.bf16.msra.mxu0 %v4189_v13 }
 0x375   :  { %3500 = vmatprep.subr.bf16.mxu0 %v4197_v25 }
 0x377   :  { %3474 = vmatpush3.bf16.msra.mxu1 %v4304_v31 }
 0x378   :  { %3508 = vmatprep.subr.bf16.mxu1 %v4151_v17  ;;  %3502 = vmatpush3.bf16.msra.mxu0 %v4197_v25 }
 0x379   :  { %3504 = vmatprep.subr.bf16.mxu0 %v4205_v34 }
 0x37a   :  { %2960 = vmatmul.mubr.f32.vlgmr.msra.gmra.mrb[30].mxu1 %v4247_v28 }
 0x37b   :  { %2962 = vmatprep.mubr.f32.mxu1 %v4252_v32  ;;  %3510 = vmatpush3.bf16.msra.mxu1 %v4151_v17 }
 0x37c   :  { %3512 = vmatprep.subr.bf16.mxu1 %v4156_v4  ;;  %3506 = vmatpush3.bf16.msra.mxu0 %v4205_v34 }
 0x37d   :  { %3540 = vmatprep.subr.bf16.mxu0 %v4213_v57 }
 0x37e   :  { %2963 = vmatmul.mubr.f32.gmra.mrb[32].mxu1 %v4261_v24 }
 0x37f   :  { %2965 = vmatprep.mubr.f32.mxu1 %v4264_v2  ;;  %3514 = vmatpush3.bf16.msra.mxu1 %v4156_v4 }
 0x380   :  { %3516 = vmatprep.subr.bf16.mxu1 %v4165_v36 }
 0x382   :  { %2966 = vmatmul.mubr.f32.gmra.mrb[34].mxu1 %v4276_v38 }
 0x383   :  { %3518 = vmatpush3.bf16.msra.mxu1 %v4165_v36 }
 0x384   :  { %3520 = vmatprep.subr.bf16.mxu1 %v4173_v49 }
 0x387   :  { %3522 = vmatpush3.bf16.msra.mxu1 %v4173_v49 }
 0x388   :  { %3524 = vmatprep.subr.bf16.mxu1 %v4183_v58 }
 0x38b   :  { %3526 = vmatpush3.bf16.msra.mxu1 %v4183_v58 }
 0x38c   :  { %3528 = vmatprep.subr.bf16.mxu1 %v4191_v18 }
 0x38f   :  { %3530 = vmatpush3.bf16.msra.mxu1 %v4191_v18 }
 0x390   :  { %3532 = vmatprep.subr.bf16.mxu1 %v4199_v23 }
 0x393   :  { %3534 = vmatpush3.bf16.msra.mxu1 %v4199_v23 }
 0x394   :  { %3536 = vmatprep.subr.bf16.mxu1 %v4207_v45 }
 0x397   :  { %3538 = vmatpush3.bf16.msra.mxu1 %v4207_v45 }
 0x398   :  { %3571 = vmatprep.subr.bf16.mxu1 %v4213_v57 }
 0x42d   :  { %v2879_v17 = vpop.f32.mrb[24].mxu1  ;;  %v2920_v4 = vpop.f32.mrb[30].mxu0 }
 0x42e   :  { %v1636_v36 = vrot.slane %v2879_v17, 7  ;;  %v1410_v52 = vpop.f32.mrb[25].mxu1  ;;  %v1505_v49 = vpop.f32.mrb[31].mxu0 }
 0x42f   :  { %v1635_v55 = vrot.slane %v1410_v52, 7 }
 0x431   :  { %v1637_v58 = vsel %vm510_vm0, %v1635_v55, %v1636_v36  ;;  %v1652_v13 = vsel %vm510_vm0, 0.0, %v1635_v55  ;;  %v2882_v18 = vpop.f32.mrb[26].mxu1  ;;  %v2923_v25 = vpop.f32.mrb[32].mxu0 }
 0x432   :  { %v1654_v34 = vadd.f32 %v2920_v4, %v1637_v58  ;;  %v1653_v23 = vadd.f32 %v1652_v13, %v1505_v49  ;;  %v1640_v3 = vrot.slane %v2882_v18, 7  ;;  %v1420_v30 = vpop.f32.mrb[27].mxu1  ;;  %v1515_v22 = vpop.f32.mrb[33].mxu0 }
 0x433   :  { %v1638_v45 = vrot.slane %v1420_v30, 7 }
 0x435   :  { %v1641_v5 = vsel %vm510_vm0, %v1638_v45, %v1640_v3  ;;  %v1639_v21 = vsel %vm510_vm0, %v1636_v36, %v1638_v45  ;;  %v2885_v26 = vpop.f32.mrb[28].mxu1  ;;  %v2926_v37 = vpop.f32.mrb[34].mxu0 }
 0x436   :  { %v1656_v40 = vadd.f32 %v2923_v25, %v1641_v5  ;;  %v1655_v56 = vadd.f32 %v1639_v21, %v1515_v22  ;;  %v1644_v43 = vrot.slane %v2885_v26, 7  ;;  %v1430_v6 = vpop.f32.mrb[29].mxu1  ;;  %v1525_v8 = vpop.f32.mrb[35].mxu0 }
 0x437   :  { %v1642_v9 = vrot.slane %v1430_v6, 7 }
 0x439   :  { %v1645_v61 = vsel %vm510_vm0, %v1642_v9, %v1644_v43  ;;  %v1643_v12 = vsel %vm510_vm0, %v1640_v3, %v1642_v9  ;;  %v4369_v3 = vld [vmem:[%s4494_s1] sm:$0xff]  ;;  %v4381_v43 = vld [vmem:[%s4494_s1 + $0x8] sm:$0xff] }
 0x43a   :  { %v1657_v14 = vadd.f32 %v1643_v12, %v1525_v8  ;;  %v1658_v19 = vadd.f32 %v2926_v37, %v1645_v61 }
 0x44d   :  { %v2961_v20 = vpop.f32.mrb[30].mxu1 }
 0x44e   :  { %v1666_v46 = vrot.slane %v2961_v20, 1  ;;  %v1600_v63 = vpop.f32.mrb[31].mxu1 }
 0x44f   :  { %v1665_v29 = vrot.slane %v1600_v63, 1  ;;  %v4397_v63 = vld [vmem:[%s4494_s1 + $0x18] sm:$0xff] }
 0x451   :  { %v1667_v51 = vsel %vm541_vm1, %v1665_v29, %v1666_v46  ;;  %v2964_v41 = vpop.f32.mrb[32].mxu1 }
 0x452   :  { %v1683_v42 = vadd.f32 %v1667_v51, %v1653_v23  ;;  %v1670_v53 = vrot.slane %v2964_v41, 1  ;;  %v1610_v10 = vpop.f32.mrb[33].mxu1  ;;  %v4403_v51 = vld [vmem:[%s4494_s1 + $0x20] sm:$0xff] }
 0x453   :  { %v1668_v60 = vrot.slane %v1610_v10, 1 }
 0x454   :  { %v1693_v33 = vmul.f32 %v4348_v15, %v1683_v42  ;;  %v4413_v42 = vld [vmem:[%s4494_s1 + $0x28] sm:$0xff] }
 0x455   :  { %v1669_v62 = vsel %vm541_vm1, %v1666_v46, %v1668_v60  ;;  %v1671_v50 = vsel %vm541_vm1, %v1668_v60, %v1670_v53  ;;  %v2967_v0 = vpop.f32.mrb[34].mxu1 }
 0x456   :  { %v1684_v35 = vadd.f32 %v1669_v62, %v1654_v34  ;;  %v1685_v44 = vadd.f32 %v1671_v50, %v1655_v56  ;;  %v1674_v48 = vrot.slane %v2967_v0, 1  ;;  %v1620_v54 = vpop.f32.mrb[35].mxu1  ;;  %v1703_v17 = vadd.f32 %v4354_v59, %v1693_v33 }
 0x457   :  { %v1672_v4 = vrot.slane %v1620_v54, 1 }
 0x458   :  { %v1694_v36 = vmul.f32 %v4348_v15, %v1684_v35  ;;  %v1695_v52 = vmul.f32 %v4348_v15, %v1685_v44  ;;  %v1682_v49 = vsel %vm541_vm1, %v1674_v48, 0.0  ;;  %v1709_v55 = vmax.f32 %v1703_v17, 0.0 }
 0x459   :  { %v1688_v58 = vadd.f32 %v1682_v49, %v1658_v19  ;;  %v1673_v13 = vsel %vm541_vm1, %v1670_v53, %v1672_v4  ;;  %v1675_v18 = vsel %vm541_vm1, %v1672_v4, %v1674_v48 }
 0x45a   :  { %v1704_v25 = vadd.f32 %v4354_v59, %v1694_v36  ;;  %v1686_v34 = vadd.f32 %v1673_v13, %v1656_v40  ;;  %v1687_v23 = vadd.f32 %v1675_v18, %v1657_v14  ;;  %v1715_v30 = vmul.f32 %v4369_v3, %v1709_v55 }
 0x45b   :  { %v1698_v22 = vmul.f32 %v4348_v15, %v1688_v58  ;;  %v1705_v45 = vadd.f32 %v4354_v59, %v1695_v52 }
 0x45c   :  { %v1710_v5 = vmax.f32 %v1704_v25, 0.0  ;;  %v1696_v21 = vmul.f32 %v4348_v15, %v1686_v34  ;;  %v1697_v26 = vmul.f32 %v4348_v15, %v1687_v23  ;;  %v1721_v37 = vadd.f32 %v1715_v30, %v4235_v7  ;;  %v4389_v7 = vld [vmem:[%s4494_s1 + $0x10] sm:$0xff] }
 0x45d   :  { %v1708_v40 = vadd.f32 %v4354_v59, %v1698_v22  ;;  %v1711_v56 = vmax.f32 %v1705_v45, 0.0 }
 0x45e   :  { %v1716_v6 = vmul.f32 %v4381_v43, %v1710_v5  ;;  %3000 = vmatprep.mubr.f32.mxu0 %v1721_v37  ;;  %3041 = vmatprep.mubr.f32.mxu1 %v1721_v37  ;;  %v1706_v8 = vadd.f32 %v4354_v59, %v1696_v21  ;;  %v1707_v9 = vadd.f32 %v4354_v59, %v1697_v26 }
 0x45f   :  { %v1717_v61 = vmul.f32 %v4389_v7, %v1711_v56  ;;  %v1714_v20 = vmax.f32 %v1708_v40, 0.0 }
 0x460   :  { %v1722_v12 = vadd.f32 %v1716_v6, %v4247_v28  ;;  %v1712_v14 = vmax.f32 %v1706_v8, 0.0  ;;  %v1713_v19 = vmax.f32 %v1707_v9, 0.0 }
 0x461   :  { %v1723_v46 = vadd.f32 %v1717_v61, %v4252_v32  ;;  %v1720_v53 = vmul.f32 %v4413_v42, %v1714_v20 }
 0x462   :  { %3001 = vmatmul.mubr.f32.vlgmr.msra.gmra.mrb[36].mxu0 %v1722_v12  ;;  %3042 = vmatmul.mubr.f32.vlgmr.msra.gmra.mrb[36].mxu1 %v1722_v12  ;;  %v1718_v29 = vmul.f32 %v4397_v63, %v1712_v14  ;;  %v1719_v28 = vmul.f32 %v4403_v51, %v1713_v19 }
 0x463   :  { %3542 = vmatpush3.bf16.msra.mxu0 %v4213_v57  ;;  %3579 = vmatpush3.bf16.msra.mxu1 %v4213_v57  ;;  %v1726_v57 = vadd.f32 %v1720_v53, %v4276_v38 }
 0x464   :  { %3003 = vmatprep.mubr.f32.mxu0 %v1723_v46  ;;  %3044 = vmatprep.mubr.f32.mxu1 %v1723_v46  ;;  %v1724_v32 = vadd.f32 %v1718_v29, %v4261_v24  ;;  %v1725_v41 = vadd.f32 %v1719_v28, %v4264_v2 }
 0x465   :  { %3544 = vmatprep.subr.bf16.mxu0 %v4243_v16  ;;  %3572 = vmatprep.subr.bf16.mxu1 %v4243_v16 }
 0x466   :  { %3004 = vmatmul.mubr.f32.gmra.mrb[38].mxu0 %v1724_v32  ;;  %3045 = vmatmul.mubr.f32.gmra.mrb[38].mxu1 %v1724_v32 }
 0x467   :  { %3546 = vmatpush3.bf16.msra.mxu0 %v4243_v16  ;;  %3580 = vmatpush3.bf16.msra.mxu1 %v4243_v16 }
 0x468   :  { %3006 = vmatprep.mubr.f32.mxu0 %v1725_v41  ;;  %3047 = vmatprep.mubr.f32.mxu1 %v1725_v41 }
 0x469   :  { %3548 = vmatprep.subr.bf16.mxu0 %v4266_v11  ;;  %3573 = vmatprep.subr.bf16.mxu1 %v4266_v11 }
 0x46a   :  { %3007 = vmatmul.mubr.f32.gmra.mrb[40].mxu0 %v1726_v57  ;;  %3048 = vmatmul.mubr.f32.gmra.mrb[40].mxu1 %v1726_v57 }
 0x46b   :  { %3550 = vmatpush3.bf16.msra.mxu0 %v4266_v11  ;;  %3581 = vmatpush3.bf16.msra.mxu1 %v4266_v11 }
 0x46c   :  { %3082 = vmatprep.mubr.f32.mxu0 %v1721_v37  ;;  %3085 = vmatprep.mubr.f32.mxu1 %v1723_v46 }
 0x46d   :  { %3552 = vmatprep.subr.bf16.mxu0 %v4278_v39  ;;  %3574 = vmatprep.subr.bf16.mxu1 %v4278_v39 }
 0x46f   :  { %3554 = vmatpush3.bf16.msra.mxu0 %v4278_v39  ;;  %3582 = vmatpush3.bf16.msra.mxu1 %v4278_v39 }
 0x470   :  { %3556 = vmatprep.subr.bf16.mxu0 %v4286_v47  ;;  %3575 = vmatprep.subr.bf16.mxu1 %v4286_v47 }
 0x473   :  { %3558 = vmatpush3.bf16.msra.mxu0 %v4286_v47  ;;  %3583 = vmatpush3.bf16.msra.mxu1 %v4286_v47 }
 0x474   :  { %3560 = vmatprep.subr.bf16.mxu0 %v4292_v27  ;;  %3576 = vmatprep.subr.bf16.mxu1 %v4292_v27 }
 0x477   :  { %3562 = vmatpush3.bf16.msra.mxu0 %v4292_v27  ;;  %3584 = vmatpush3.bf16.msra.mxu1 %v4292_v27 }
 0x478   :  { %3564 = vmatprep.subr.bf16.mxu0 %v4298_v1  ;;  %3577 = vmatprep.subr.bf16.mxu1 %v4298_v1 }
 0x47b   :  { %3566 = vmatpush3.bf16.msra.mxu0 %v4298_v1  ;;  %3585 = vmatpush3.bf16.msra.mxu1 %v4298_v1 }
 0x47c   :  { %3568 = vmatprep.subr.bf16.mxu0 %v4304_v31  ;;  %3578 = vmatprep.subr.bf16.mxu1 %v4304_v31 }
 0x47f   :  { %3570 = vmatpush3.bf16.msra.mxu0 %v4304_v31  ;;  %3586 = vmatpush3.bf16.msra.mxu1 %v4304_v31 }
 0x482   :  { %3083 = vmatmul.mubr.f32.vlgmr.msra.gmra.mrb[42].mxu0 %v1722_v12  ;;  %3086 = vmatmul.mubr.f32.vlgmr.msra.gmra.mrb[42].mxu1 %v1724_v32 }
 0x483   :  { %3088 = vmatprep.mubr.f32.mxu1 %v1725_v41 }
 0x486   :  { %3089 = vmatmul.mubr.f32.gmra.mrb[44].mxu1 %v1726_v57 }
 0x535   :  { %v3002_v16 = vpop.f32.mrb[36].mxu0  ;;  %v3043_v24 = vpop.f32.mrb[36].mxu1 }
 0x536   :  { %v2019_v2 = vrot.slane %v3002_v16, 7  ;;  %v1793_v11 = vpop.f32.mrb[37].mxu0  ;;  %v1888_v38 = vpop.f32.mrb[37].mxu1 }
 0x537   :  { %v2018_v39 = vrot.slane %v1793_v11, 7 }
 0x539   :  { %v2020_v47 = vsel %vm510_vm0, %v2018_v39, %v2019_v2  ;;  %v2035_v27 = vsel %vm510_vm0, 0.0, %v2018_v39  ;;  %v3005_v1 = vpop.f32.mrb[38].mxu0  ;;  %v3046_v10 = vpop.f32.mrb[38].mxu1 }
 0x53a   :  { %v2037_v60 = vadd.f32 %v3043_v24, %v2020_v47  ;;  %v2036_v33 = vadd.f32 %v2035_v27, %v1888_v38  ;;  %v2023_v62 = vrot.slane %v3005_v1, 7  ;;  %v1803_v31 = vpop.f32.mrb[39].mxu0  ;;  %v1898_v50 = vpop.f32.mrb[39].mxu1 }
 0x53b   :  { %v2021_v0 = vrot.slane %v1803_v31, 7 }
 0x53d   :  { %v2024_v35 = vsel %vm510_vm0, %v2021_v0, %v2023_v62  ;;  %v2022_v44 = vsel %vm510_vm0, %v2019_v2, %v2021_v0  ;;  %v3008_v48 = vpop.f32.mrb[40].mxu0  ;;  %v3049_v54 = vpop.f32.mrb[40].mxu1 }
 0x53e   :  { %v2039_v17 = vadd.f32 %v3046_v10, %v2024_v35  ;;  %v2038_v4 = vadd.f32 %v2022_v44, %v1898_v50  ;;  %v2027_v36 = vrot.slane %v3008_v48, 7  ;;  %v1813_v52 = vpop.f32.mrb[41].mxu0  ;;  %v1908_v49 = vpop.f32.mrb[41].mxu1 }
 0x53f   :  { %v2025_v55 = vrot.slane %v1813_v52, 7 }
 0x541   :  { %v2028_v58 = vsel %vm510_vm0, %v2025_v55, %v2027_v36  ;;  %v2026_v13 = vsel %vm510_vm0, %v2023_v62, %v2025_v55 }
 0x542   :  { %v2040_v18 = vadd.f32 %v2026_v13, %v1908_v49  ;;  %v2041_v25 = vadd.f32 %v3049_v54, %v2028_v58 }
 0x555   :  { %v3084_v34 = vpop.f32.mrb[42].mxu0  ;;  %v3087_v23 = vpop.f32.mrb[42].mxu1 }
 0x556   :  { %v2049_v30 = vrot.slane %v3084_v34, 1  ;;  %v2053_v22 = vrot.slane %v3087_v23, 1  ;;  %v1983_v45 = vpop.f32.mrb[43].mxu0  ;;  %v1993_v5 = vpop.f32.mrb[43].mxu1 }
 0x557   :  { %v2048_v21 = vrot.slane %v1983_v45, 1  ;;  %v2051_v26 = vrot.slane %v1993_v5, 1 }
 0x559   :  { %v2050_v37 = vsel %vm541_vm1, %v2048_v21, %v2049_v30  ;;  %v2052_v40 = vsel %vm541_vm1, %v2049_v30, %v2051_v26  ;;  %v2054_v56 = vsel %vm541_vm1, %v2051_v26, %v2053_v22  ;;  %v3090_v6 = vpop.f32.mrb[44].mxu1 }
 0x55a   :  { %v2066_v8 = vadd.f32 %v2050_v37, %v2036_v33  ;;  %v2067_v9 = vadd.f32 %v2052_v40, %v2037_v60  ;;  %v2068_v61 = vadd.f32 %v2054_v56, %v2038_v4  ;;  %v2057_v12 = vrot.slane %v3090_v6, 1  ;;  %v2003_v14 = vpop.f32.mrb[45].mxu1 }
 0x55b   :  { %v2055_v19 = vrot.slane %v2003_v14, 1 }
 0x55c   :  { %v2072_v20 = vmul.f32 %v4348_v15, %v2066_v8  ;;  %v2073_v46 = vmul.f32 %v4348_v15, %v2067_v9  ;;  %v2074_v29 = vmul.f32 %v4348_v15, %v2068_v61  ;;  %v2065_v28 = vsel %vm541_vm1, %v2057_v12, 0.0 }
 0x55d   :  { %v2071_v32 = vadd.f32 %v2065_v28, %v2041_v25  ;;  %v2056_v41 = vsel %vm541_vm1, %v2053_v22, %v2055_v19  ;;  %v2058_v53 = vsel %vm541_vm1, %v2055_v19, %v2057_v12 }
 0x55e   :  { %v2078_v57 = vadd.f32 %v4354_v59, %v2072_v20  ;;  %v2079_v16 = vadd.f32 %v4354_v59, %v2073_v46  ;;  %v2080_v24 = vadd.f32 %v4354_v59, %v2074_v29  ;;  %v2069_v2 = vadd.f32 %v2056_v41, %v2039_v17 }
 0x55f   :  { %v2077_v11 = vmul.f32 %v4348_v15, %v2071_v32  ;;  %v2070_v38 = vadd.f32 %v2058_v53, %v2040_v18 }
 0x560   :  { %v2084_v39 = vmax.f32 %v2078_v57, 0.0  ;;  %v2085_v47 = vmax.f32 %v2079_v16, 0.0  ;;  %v2086_v27 = vmax.f32 %v2080_v24, 0.0  ;;  %v2075_v1 = vmul.f32 %v4348_v15, %v2069_v2 }
 0x561   :  { %v2083_v10 = vadd.f32 %v4354_v59, %v2077_v11  ;;  %v2076_v60 = vmul.f32 %v4348_v15, %v2070_v38 }
 0x562   :  { %v2090_v33 = vmul.f32 %v4369_v3, %v2084_v39  ;;  %v2091_v62 = vmul.f32 %v4381_v43, %v2085_v47  ;;  %v2092_v31 = vmul.f32 %v4389_v7, %v2086_v27  ;;  %v2081_v50 = vadd.f32 %v4354_v59, %v2075_v1 }
 0x563   :  { %v2089_v0 = vmax.f32 %v2083_v10, 0.0  ;;  %v2082_v35 = vadd.f32 %v4354_v59, %v2076_v60 }
 0x564   :  { %2096 = vst [vmem:[%s4499_s6] sm:$0xff] %v2090_v33  ;;  %2097 = vst [vmem:[%s4499_s6 + $0x8] sm:$0xff] %v2091_v62  ;;  %v2087_v15 = vmax.f32 %v2081_v50, 0.0 }
 0x565   :  { %2098 = vst [vmem:[%s4499_s6 + $0x10] sm:$0xff] %v2092_v31  ;;  %v2095_v3 = vmul.f32 %v4413_v42, %v2089_v0  ;;  %v2088_v43 = vmax.f32 %v2082_v35, 0.0 }
 0x566   :  { %v2093_v7 = vmul.f32 %v4397_v63, %v2087_v15 }
 0x567   :  { %2101 = vst [vmem:[%s4499_s6 + $0x28] sm:$0xff] %v2095_v3  ;;  %v2094_v59 = vmul.f32 %v4403_v51, %v2088_v43 }
 0x568   :  { %2099 = vst [vmem:[%s4499_s6 + $0x18] sm:$0xff] %v2093_v7 }
 0x569   :  { %2100 = vst [vmem:[%s4499_s6 + $0x20] sm:$0xff] %v2094_v59 }
 0x56a   :  { %2106 = vsyncpa [#allocation3], 1 }
 0x56b   :  { %2107 = vsyncpa [#allocation5], 1 }

</bundles_post_ra>
